<compile_context>
chip_gen: v5e
topology: v5e:2x2
jax: 0.10.0
libtpu: 0.0.40
codegen_flags: <defaults>
</compile_context>

<pallas_src>
import functools

import jax
import jax.numpy as jnp
import numpy as np
from jax.experimental import pallas as pl
from jax.experimental.pallas import tpu as pltpu


# ----------------------------------------------------------------------------
# Wrapper-side weight folding: HWIO (3,3,Ci,Co) -> (3, Win*Ci, Wout*Co)
# banded matrices, one per kernel row ky.  The W-direction 3-tap window, the
# stride and the zero padding are all baked into the band structure:
#   Wf[ky, wi*Ci+ci, wo*Co+co] = w[ky, wi - stride*wo + 1, ci, co]  (0 elsewhere)
# ----------------------------------------------------------------------------
def _fold_conv_weight(w_hwio, w_in, w_out, stride, dtype):
    KH, KW, Ci, Co = w_hwio.shape
    ky, kx, ci, co, wo = np.meshgrid(
        np.arange(KH), np.arange(KW), np.arange(Ci), np.arange(Co),
        np.arange(w_out), indexing="ij")
    wi = stride * wo + kx - 1
    valid = (wi >= 0) & (wi < w_in)
    ky, kx, ci, co, wo, wi = (a[valid] for a in (ky, kx, ci, co, wo, wi))
    vals = w_hwio[ky, kx, ci, co].astype(dtype)
    wf = jnp.zeros((KH, w_in * Ci, w_out * Co), dtype)
    return wf.at[ky, wi * Ci + ci, wo * Co + co].set(vals)


# ----------------------------------------------------------------------------
# In-kernel helpers.
# ----------------------------------------------------------------------------
def _shift_rows(x3, delta):
    """out[:, h, :] = x3[:, h + delta, :]; zero rows where h + delta is OOB.

    Only the one-row halo strip is zeroed (no whole-buffer zero fill); the
    per-image concat keeps the shift from leaking rows across batch images.
    """
    n, h, l = x3.shape
    z = jnp.zeros((n, 1, l), x3.dtype)
    if delta == -1:
        return jnp.concatenate([z, x3[:, :h - 1, :]], axis=1)
    if delta == 1:
        return jnp.concatenate([x3[:, 1:, :], z], axis=1)
    return x3


def _conv3x3_bn_relu(x3, wf_ref, gamma_ref, beta_ref, *, stride, Ho, Wo, Cout,
                     eps, mxu_dtype):
    """Fused conv3x3(pad=1) + training-mode BatchNorm + ReLU.

    x3:       (N, Hin, Win*Cin) activation value (W and C folded on lanes).
    wf_ref:   (3, Win*Cin, Wo*Cout) folded weights (one banded matrix per ky).
    gamma/beta: (1, Cout).
    Returns   (N*Ho, Wo*Cout) float32.
    """
    N, Hin, Lin = x3.shape

    def tap_matmul(sel3, ky):
        a = sel3.reshape(-1, Lin).astype(mxu_dtype)          # bf16 MXU inputs
        return jnp.dot(a, wf_ref[ky], preferred_element_type=jnp.float32)

    if stride == 1:
        # One MXU matmul per kernel row; the W taps + padding live in the
        # folded weights, the H halo is a zero-row shifted view.
        acc = tap_matmul(x3, 1)
        acc += tap_matmul(_shift_rows(x3, -1), 0)
        acc += tap_matmul(_shift_rows(x3, +1), 2)
    else:
        # TODO(synk): stride > 1 path is functional but unexercised by the demo
        # (stride=1); a production version should use strided pl.ds ref loads.
        sels = []
        for ky in range(3):
            lo = 1 if ky == 0 else 0                         # first valid out row
            last_hi = stride * (Ho - 1) + ky - 1
            hi = Ho if last_hi <= Hin - 1 else Ho - 1        # one-past-last valid
            first = stride * lo + ky - 1
            body = x3[:, first:first + stride * (hi - lo - 1) + 1:stride, :]
            parts = []
            if lo > 0:
                parts.append(jnp.zeros((N, lo, Lin), x3.dtype))
            parts.append(body)
            if hi < Ho:
                parts.append(jnp.zeros((N, Ho - hi, Lin), x3.dtype))
            sels.append(jnp.concatenate(parts, axis=1) if len(parts) > 1 else body)
        acc = tap_matmul(sels[0], 0)
        acc += tap_matmul(sels[1], 1)
        acc += tap_matmul(sels[2], 2)

    # BatchNorm, training mode (per-batch stats, biased variance), ONE pass:
    # sum and sum-of-squares together.  Per-channel fold / broadcast across the
    # W-interleaved lane axis are tiny 0/1 matmuls (no lane<->sublane reshapes).
    L_out = Wo * Cout
    fold = (jax.lax.broadcasted_iota(jnp.int32, (L_out, Cout), 0) % Cout ==
            jax.lax.broadcasted_iota(jnp.int32, (L_out, Cout), 1)
            ).astype(jnp.float32)                            # (Wo*Cout, Cout)
    bcast = (jax.lax.broadcasted_iota(jnp.int32, (Cout, L_out), 0) ==
             jax.lax.broadcasted_iota(jnp.int32, (Cout, L_out), 1) % Cout
             ).astype(jnp.float32)                           # (Cout, Wo*Cout)

    s1 = jnp.dot(jnp.sum(acc, axis=0, keepdims=True), fold,
                 preferred_element_type=jnp.float32)         # (1, Cout)
    s2 = jnp.dot(jnp.sum(acc * acc, axis=0, keepdims=True), fold,
                 preferred_element_type=jnp.float32)
    count = acc.shape[0] * Wo                                # N*Ho*Wo samples/chan
    mean = s1 / count
    var = jnp.maximum(s2 / count - mean * mean, 0.0)         # biased, one pass
    scale = gamma_ref[...] * jax.lax.rsqrt(var + eps)        # (1, Cout)
    shift = beta_ref[...] - mean * scale
    scale_l = jnp.dot(scale, bcast, preferred_element_type=jnp.float32)
    shift_l = jnp.dot(shift, bcast, preferred_element_type=jnp.float32)
    return jnp.maximum(acc * scale_l + shift_l, 0.0)


# ----------------------------------------------------------------------------
# Fused ResidualBlock kernel.
# ----------------------------------------------------------------------------
def _residual_block_kernel(*refs, N, H, W, Cout, stride, eps, has_downsample,
                           mxu_dtype):
    if has_downsample:
        (x_ref, wf1_ref, g1_ref, b1_ref, wf2_ref, g2_ref, b2_ref,
         wfd_ref, gd_ref, bd_ref, out_ref) = refs
    else:
        (x_ref, wf1_ref, g1_ref, b1_ref, wf2_ref, g2_ref, b2_ref,
         out_ref) = refs

    Ho = (H - 1) // stride + 1
    Wo = (W - 1) // stride + 1

    # out = relu(bn1(conv1(x)))   (nn.Dropout with p = 0.0 is the identity)
    mid = _conv3x3_bn_relu(x_ref[...], wf1_ref, g1_ref, b1_ref,
                           stride=stride, Ho=Ho, Wo=Wo, Cout=Cout,
                           eps=eps, mxu_dtype=mxu_dtype)

    # out = relu(bn2(conv2(out))); the intermediate never leaves VMEM/vregs.
    out = _conv3x3_bn_relu(mid.reshape(N, Ho, Wo * Cout), wf2_ref, g2_ref, b2_ref,
                           stride=1, Ho=Ho, Wo=Wo, Cout=Cout,
                           eps=eps, mxu_dtype=mxu_dtype)

    # Residual computed / read LAST so it is never live across both convs.
    if has_downsample:
        residual = _conv3x3_bn_relu(x_ref[...], wfd_ref, gd_ref, bd_ref,
                                    stride=stride, Ho=Ho, Wo=Wo, Cout=Cout,
                                    eps=eps, mxu_dtype=mxu_dtype)
    else:
        # Identity: fresh f32 read of the input, upcast happens at the add.
        residual = x_ref[...].reshape(N * Ho, Wo * Cout).astype(jnp.float32)

    # Lane-dense store: last dim = Wo*Cout (128 at the demo shape) -> full vst.
    out_ref[...] = (out + residual).astype(out_ref.dtype)


# ----------------------------------------------------------------------------
# ResidualBlock forward (NCHW in / NCHW out, like the PyTorch module).
# ----------------------------------------------------------------------------
def residual_block_forward(x_nchw, params, *, stride, dropout_p, eps=1e-5,
                           mxu_dtype=jnp.bfloat16):
    # TODO(synk): training-mode nn.Dropout with p > 0 is stochastic and would
    # need the in-kernel PRNG (pltpu.prng_seed / prng_random_bits); the demo
    # uses p = 0.0, which is exactly the identity.
    assert dropout_p == 0.0

    N, Cin, H, W = x_nchw.shape
    Cout = params["w1"].shape[-1]
    has_downsample = Cin != Cout
    if not has_downsample:
        # Identity residual is only shape-consistent for stride == 1 (the
        # PyTorch module has the same constraint).
        assert stride == 1
    Ho = (H - 1) // stride + 1
    Wo = (W - 1) // stride + 1

    # NCHW -> (N, H, W*Cin): W and C fold together onto the 128-wide lane axis.
    x = jnp.transpose(x_nchw, (0, 2, 3, 1)).reshape(N, H, W * Cin)

    wf1 = _fold_conv_weight(params["w1"], W, Wo, stride, mxu_dtype)
    wf2 = _fold_conv_weight(params["w2"], Wo, Wo, 1, mxu_dtype)

    def row(v):
        return v.reshape(1, -1).astype(jnp.float32)

    args = [x, wf1, row(params["g1"]), row(params["b1"]),
            wf2, row(params["g2"]), row(params["b2"])]
    if has_downsample:
        wfd = _fold_conv_weight(params["wd"], W, Wo, stride, mxu_dtype)
        args += [wfd, row(params["gd"]), row(params["bd"])]

    kernel = functools.partial(
        _residual_block_kernel, N=N, H=H, W=W, Cout=Cout, stride=stride,
        eps=eps, has_downsample=has_downsample, mxu_dtype=mxu_dtype)

    out2d = pl.pallas_call(
        kernel,
        out_shape=jax.ShapeDtypeStruct((N * Ho, Wo * Cout), x_nchw.dtype),
        in_specs=[pl.BlockSpec(memory_space=pltpu.MemorySpace.VMEM)] * len(args),
        out_specs=pl.BlockSpec(memory_space=pltpu.MemorySpace.VMEM),
        compiler_params=pltpu.CompilerParams(
            # Explicit limit matters on v5e (16 MiB default scoped VMEM); the
            # demo working set is well under 1 MiB.
            vmem_limit_bytes=32 * 1024 * 1024),
    )(*args)
    # TODO(synk): for production ResNet shapes (Cin >= 128, 56x56 maps) switch
    # to per-tap K=Cin accumulation (no folded-W / no materialized im2col),
    # grid over (N, output-row blocks) with two-phase *global* BN statistics
    # (sum/sumsq accumulation pass + normalize pass), keep weights VMEM-resident
    # via constant index_maps, use dimension_semantics=("parallel", ...,
    # "arbitrary") for v7x's 2 TensorCores, and pick the tile height from
    # pltpu.get_tpu_info().vmem_capacity_bytes (64 MiB v7x vs 128 MiB v5e/v6e).
    # At the demo shape the whole block is a few vregs, so one fused gridless
    # call is optimal.

    out = out2d.reshape(N, Ho, Wo, Cout)
    return jnp.transpose(out, (0, 3, 1, 2))  # NHWC -> NCHW


# ----------------------------------------------------------------------------
# Pure-JAX reference (sanity check).
# ----------------------------------------------------------------------------
def _ref_conv_bn_relu(x_nchw, w_hwio, gamma, beta, stride, eps=1e-5):
    y = jax.lax.conv_general_dilated(
        x_nchw, w_hwio, (stride, stride), ((1, 1), (1, 1)),
        dimension_numbers=("NCHW", "HWIO", "NCHW"))
    mean = jnp.mean(y, axis=(0, 2, 3), keepdims=True)
    var = jnp.mean((y - mean) ** 2, axis=(0, 2, 3), keepdims=True)
    y = (y - mean) * (gamma.reshape(1, -1, 1, 1) *
                      jax.lax.rsqrt(var + eps)) + beta.reshape(1, -1, 1, 1)
    return jnp.maximum(y, 0.0)


def _ref_residual_block(x_nchw, params, stride):
    Cin = x_nchw.shape[1]
    Cout = params["w1"].shape[-1]
    if Cin == Cout:
        residual = x_nchw
    else:
        residual = _ref_conv_bn_relu(x_nchw, params["wd"], params["gd"],
                                     params["bd"], stride)
    out = _ref_conv_bn_relu(x_nchw, params["w1"], params["g1"], params["b1"],
                            stride)
    out = _ref_conv_bn_relu(out, params["w2"], params["g2"], params["b2"], 1)
    return out + residual


# ----------------------------------------------------------------------------
# Main
# ----------------------------------------------------------------------------
if __name__ == "__main__":
    # ResidualBlock(in_channel=4, out_channel=8, stride=1, dropout=0.0)
    N, Cin, H, W = 2, 4, 16, 16
    Cout, stride, dropout_p = 8, 1, 0.0

    key = jax.random.PRNGKey(0)
    k = jax.random.split(key, 8)

    x = jax.random.normal(k[0], (N, Cin, H, W), jnp.float32)

    params = {
        # conv weights stored HWIO: (3, 3, Cin, Cout)
        "w1": 0.1 * jax.random.normal(k[1], (3, 3, Cin, Cout), jnp.float32),
        "w2": 0.1 * jax.random.normal(k[2], (3, 3, Cout, Cout), jnp.float32),
        "wd": 0.1 * jax.random.normal(k[3], (3, 3, Cin, Cout), jnp.float32),
        # BatchNorm affine params
        "g1": 1.0 + 0.1 * jax.random.normal(k[4], (Cout,), jnp.float32),
        "b1": 0.1 * jax.random.normal(k[5], (Cout,), jnp.float32),
        "g2": 1.0 + 0.1 * jax.random.normal(k[6], (Cout,), jnp.float32),
        "b2": 0.1 * jax.random.normal(k[7], (Cout,), jnp.float32),
        "gd": jnp.ones((Cout,), jnp.float32),
        "bd": jnp.zeros((Cout,), jnp.float32),
    }

    out = residual_block_forward(x, params, stride=stride, dropout_p=dropout_p)
    out = jax.block_until_ready(out)

    ref = _ref_residual_block(x, params, stride)
    assert out.shape == (N, Cout, H, W), out.shape
    # bf16 MXU inputs (f32 accumulation) + one-pass variance introduce ~0.5-1%
    # drift vs. the pure-f32 reference; documented and absorbed here.
    assert jnp.allclose(out, ref, atol=2e-2, rtol=2e-2), float(
        jnp.max(jnp.abs(out - ref)))

    print("KERNEL_OK")
</pallas_src>

<mosaic_0001>
module attributes {stable_mosaic.version = 11 : i64} {
  func.func @_residual_block_kernel(%arg0: memref<2x16x64xf32, #tpu.memory_space<vmem>>, %arg1: memref<3x64x128xbf16, #tpu.memory_space<vmem>>, %arg2: memref<1x8xf32, #tpu.memory_space<vmem>>, %arg3: memref<1x8xf32, #tpu.memory_space<vmem>>, %arg4: memref<3x128x128xbf16, #tpu.memory_space<vmem>>, %arg5: memref<1x8xf32, #tpu.memory_space<vmem>>, %arg6: memref<1x8xf32, #tpu.memory_space<vmem>>, %arg7: memref<3x64x128xbf16, #tpu.memory_space<vmem>>, %arg8: memref<1x8xf32, #tpu.memory_space<vmem>>, %arg9: memref<1x8xf32, #tpu.memory_space<vmem>>, %arg10: memref<32x128xf32, #tpu.memory_space<vmem>>) attributes {dimension_semantics = [], scalar_prefetch = 0 : i64, scratch_operands = 0 : i64, tpu.core_type = #tpu.core_type<tc>} {
    %c0 = arith.constant 0 : index
    %c0_0 = arith.constant 0 : index
    %c0_1 = arith.constant 0 : index
    %0 = vector.load %arg0[%c0, %c0_0, %c0_1] : memref<2x16x64xf32, #tpu.memory_space<vmem>>, vector<2x16x64xf32>
    %1 = vector.shape_cast %0 : vector<2x16x64xf32> to vector<32x64xf32>
    %2 = arith.truncf %1 : vector<32x64xf32> to vector<32x64xbf16>
    %c1 = arith.constant 1 : index
    %c0_2 = arith.constant 0 : index
    %c0_3 = arith.constant 0 : index
    %3 = vector.load %arg1[%c1, %c0_2, %c0_3] : memref<3x64x128xbf16, #tpu.memory_space<vmem>>, vector<1x64x128xbf16>
    %4 = vector.shape_cast %3 : vector<1x64x128xbf16> to vector<64x128xbf16>
    %cst = arith.constant dense<0.000000e+00> : vector<32x128xf32>
    %5 = tpu.matmul %2, %4, %cst {dimension_numbers = #tpu.dot_dimension_numbers<[1], [0], [0], [1], [0, 0, 1, 1], [], []>} : vector<32x64xbf16>, vector<64x128xbf16>, vector<32x128xf32> -> vector<32x128xf32>
    %cst_4 = arith.constant 0.000000e+00 : f32
    %6 = vector.broadcast %cst_4 : f32 to vector<2x1x64xf32>
    %7 = vector.extract_strided_slice %0 {offsets = [0, 0, 0], sizes = [2, 15, 64], strides = [1, 1, 1]} : vector<2x16x64xf32> to vector<2x15x64xf32>
    %8 = tpu.concatenate %6, %7 in 1 : vector<2x1x64xf32>, vector<2x15x64xf32> -> vector<2x16x64xf32>
    %9 = vector.shape_cast %8 : vector<2x16x64xf32> to vector<32x64xf32>
    %10 = arith.truncf %9 : vector<32x64xf32> to vector<32x64xbf16>
    %c0_5 = arith.constant 0 : index
    %c0_6 = arith.constant 0 : index
    %c0_7 = arith.constant 0 : index
    %11 = vector.load %arg1[%c0_5, %c0_6, %c0_7] : memref<3x64x128xbf16, #tpu.memory_space<vmem>>, vector<1x64x128xbf16>
    %12 = vector.shape_cast %11 : vector<1x64x128xbf16> to vector<64x128xbf16>
    %cst_8 = arith.constant dense<0.000000e+00> : vector<32x128xf32>
    %13 = tpu.matmul %10, %12, %cst_8 {dimension_numbers = #tpu.dot_dimension_numbers<[1], [0], [0], [1], [0, 0, 1, 1], [], []>} : vector<32x64xbf16>, vector<64x128xbf16>, vector<32x128xf32> -> vector<32x128xf32>
    %14 = arith.addf %5, %13 : vector<32x128xf32>
    %cst_9 = arith.constant 0.000000e+00 : f32
    %15 = vector.broadcast %cst_9 : f32 to vector<2x1x64xf32>
    %16 = vector.extract_strided_slice %0 {offsets = [0, 1, 0], sizes = [2, 15, 64], strides = [1, 1, 1]} : vector<2x16x64xf32> to vector<2x15x64xf32>
    %17 = tpu.concatenate %16, %15 in 1 : vector<2x15x64xf32>, vector<2x1x64xf32> -> vector<2x16x64xf32>
    %18 = vector.shape_cast %17 : vector<2x16x64xf32> to vector<32x64xf32>
    %19 = arith.truncf %18 : vector<32x64xf32> to vector<32x64xbf16>
    %c2 = arith.constant 2 : index
    %c0_10 = arith.constant 0 : index
    %c0_11 = arith.constant 0 : index
    %20 = vector.load %arg1[%c2, %c0_10, %c0_11] : memref<3x64x128xbf16, #tpu.memory_space<vmem>>, vector<1x64x128xbf16>
    %21 = vector.shape_cast %20 : vector<1x64x128xbf16> to vector<64x128xbf16>
    %cst_12 = arith.constant dense<0.000000e+00> : vector<32x128xf32>
    %22 = tpu.matmul %19, %21, %cst_12 {dimension_numbers = #tpu.dot_dimension_numbers<[1], [0], [0], [1], [0, 0, 1, 1], [], []>} : vector<32x64xbf16>, vector<64x128xbf16>, vector<32x128xf32> -> vector<32x128xf32>
    %23 = arith.addf %14, %22 : vector<32x128xf32>
    %24 = tpu.iota {dimensions = array<i32: 0>} : vector<128x8xi32>
    %c8_i32 = arith.constant 8 : i32
    %c0_i32 = arith.constant 0 : i32
    %25 = arith.cmpi eq, %c8_i32, %c0_i32 : i32
    %c1_i32 = arith.constant 1 : i32
    %26 = arith.select %25, %c1_i32, %c8_i32 : i32
    %27 = vector.broadcast %26 : i32 to vector<128x8xi32>
    %28 = arith.remsi %24, %27 : vector<128x8xi32>
    %c0_i32_13 = arith.constant 0 : i32
    %29 = vector.broadcast %c0_i32_13 : i32 to vector<128x8xi32>
    %30 = arith.cmpi ne, %28, %29 : vector<128x8xi32>
    %c0_i32_14 = arith.constant 0 : i32
    %31 = vector.broadcast %c0_i32_14 : i32 to vector<128x8xi32>
    %32 = arith.cmpi slt, %28, %31 : vector<128x8xi32>
    %c0_i32_15 = arith.constant 0 : i32
    %33 = arith.cmpi slt, %26, %c0_i32_15 : i32
    %34 = vector.broadcast %33 : i1 to vector<128x8xi1>
    %35 = vector.broadcast %34 : vector<128x8xi1> to vector<128x8xi1>
    %36 = arith.xori %32, %35 : vector<128x8xi1>
    %37 = arith.andi %36, %30 : vector<128x8xi1>
    %38 = vector.broadcast %26 : i32 to vector<128x8xi32>
    %39 = arith.addi %28, %38 : vector<128x8xi32>
    %40 = arith.select %37, %39, %28 : vector<128x8xi1>, vector<128x8xi32>
    %41 = tpu.iota {dimensions = array<i32: 1>} : vector<128x8xi32>
    %42 = arith.cmpi eq, %40, %41 : vector<128x8xi32>
    %43 = arith.extui %42 : vector<128x8xi1> to vector<128x8xi32>
    %44 = arith.sitofp %43 : vector<128x8xi32> to vector<128x8xf32>
    %45 = tpu.iota {dimensions = array<i32: 0>} : vector<8x128xi32>
    %46 = tpu.iota {dimensions = array<i32: 1>} : vector<8x128xi32>
    %c8_i32_16 = arith.constant 8 : i32
    %c0_i32_17 = arith.constant 0 : i32
    %47 = arith.cmpi eq, %c8_i32_16, %c0_i32_17 : i32
    %c1_i32_18 = arith.constant 1 : i32
    %48 = arith.select %47, %c1_i32_18, %c8_i32_16 : i32
    %49 = vector.broadcast %48 : i32 to vector<8x128xi32>
    %50 = arith.remsi %46, %49 : vector<8x128xi32>
    %c0_i32_19 = arith.constant 0 : i32
    %51 = vector.broadcast %c0_i32_19 : i32 to vector<8x128xi32>
    %52 = arith.cmpi ne, %50, %51 : vector<8x128xi32>
    %c0_i32_20 = arith.constant 0 : i32
    %53 = vector.broadcast %c0_i32_20 : i32 to vector<8x128xi32>
    %54 = arith.cmpi slt, %50, %53 : vector<8x128xi32>
    %c0_i32_21 = arith.constant 0 : i32
    %55 = arith.cmpi slt, %48, %c0_i32_21 : i32
    %56 = vector.broadcast %55 : i1 to vector<8x128xi1>
    %57 = vector.broadcast %56 : vector<8x128xi1> to vector<8x128xi1>
    %58 = arith.xori %54, %57 : vector<8x128xi1>
    %59 = arith.andi %58, %52 : vector<8x128xi1>
    %60 = vector.broadcast %48 : i32 to vector<8x128xi32>
    %61 = arith.addi %50, %60 : vector<8x128xi32>
    %62 = arith.select %59, %61, %50 : vector<8x128xi1>, vector<8x128xi32>
    %63 = arith.cmpi eq, %45, %62 : vector<8x128xi32>
    %64 = arith.extui %63 : vector<8x128xi1> to vector<8x128xi32>
    %65 = arith.sitofp %64 : vector<8x128xi32> to vector<8x128xf32>
    %cst_22 = arith.constant dense<0.000000e+00> : vector<128xf32>
    %66 = vector.multi_reduction <add>, %23, %cst_22 [0] : vector<32x128xf32> to vector<128xf32>
    %67 = vector.shape_cast %66 : vector<128xf32> to vector<1x128xf32>
    %cst_23 = arith.constant dense<0.000000e+00> : vector<1x8xf32>
    %68 = tpu.matmul %67, %44, %cst_23 {dimension_numbers = #tpu.dot_dimension_numbers<[1], [0], [0], [1], [0, 0, 1, 1], [], []>} : vector<1x128xf32>, vector<128x8xf32>, vector<1x8xf32> -> vector<1x8xf32>
    %69 = arith.mulf %23, %23 : vector<32x128xf32>
    %cst_24 = arith.constant dense<0.000000e+00> : vector<128xf32>
    %70 = vector.multi_reduction <add>, %69, %cst_24 [0] : vector<32x128xf32> to vector<128xf32>
    %71 = vector.shape_cast %70 : vector<128xf32> to vector<1x128xf32>
    %cst_25 = arith.constant dense<0.000000e+00> : vector<1x8xf32>
    %72 = tpu.matmul %71, %44, %cst_25 {dimension_numbers = #tpu.dot_dimension_numbers<[1], [0], [0], [1], [0, 0, 1, 1], [], []>} : vector<1x128xf32>, vector<128x8xf32>, vector<1x8xf32> -> vector<1x8xf32>
    %cst_26 = arith.constant 5.120000e+02 : f32
    %73 = vector.broadcast %cst_26 : f32 to vector<1x8xf32>
    %74 = arith.divf %68, %73 : vector<1x8xf32>
    %cst_27 = arith.constant 5.120000e+02 : f32
    %75 = vector.broadcast %cst_27 : f32 to vector<1x8xf32>
    %76 = arith.divf %72, %75 : vector<1x8xf32>
    %77 = arith.mulf %74, %74 : vector<1x8xf32>
    %78 = arith.subf %76, %77 : vector<1x8xf32>
    %cst_28 = arith.constant 0.000000e+00 : f32
    %79 = vector.broadcast %cst_28 : f32 to vector<1x8xf32>
    %80 = arith.maximumf %78, %79 : vector<1x8xf32>
    %c0_29 = arith.constant 0 : index
    %c0_30 = arith.constant 0 : index
    %81 = vector.load %arg2[%c0_29, %c0_30] : memref<1x8xf32, #tpu.memory_space<vmem>>, vector<1x8xf32>
    %cst_31 = arith.constant 9.99999974E-6 : f32
    %82 = vector.broadcast %cst_31 : f32 to vector<1x8xf32>
    %83 = arith.addf %80, %82 : vector<1x8xf32>
    %84 = math.rsqrt %83 : vector<1x8xf32>
    %85 = arith.mulf %81, %84 : vector<1x8xf32>
    %c0_32 = arith.constant 0 : index
    %c0_33 = arith.constant 0 : index
    %86 = vector.load %arg3[%c0_32, %c0_33] : memref<1x8xf32, #tpu.memory_space<vmem>>, vector<1x8xf32>
    %87 = arith.mulf %74, %85 : vector<1x8xf32>
    %88 = arith.subf %86, %87 : vector<1x8xf32>
    %cst_34 = arith.constant dense<0.000000e+00> : vector<1x128xf32>
    %89 = tpu.matmul %85, %65, %cst_34 {dimension_numbers = #tpu.dot_dimension_numbers<[1], [0], [0], [1], [0, 0, 1, 1], [], []>} : vector<1x8xf32>, vector<8x128xf32>, vector<1x128xf32> -> vector<1x128xf32>
    %cst_35 = arith.constant dense<0.000000e+00> : vector<1x128xf32>
    %90 = tpu.matmul %88, %65, %cst_35 {dimension_numbers = #tpu.dot_dimension_numbers<[1], [0], [0], [1], [0, 0, 1, 1], [], []>} : vector<1x8xf32>, vector<8x128xf32>, vector<1x128xf32> -> vector<1x128xf32>
    %91 = vector.broadcast %89 : vector<1x128xf32> to vector<32x128xf32>
    %92 = arith.mulf %23, %91 : vector<32x128xf32>
    %93 = vector.broadcast %90 : vector<1x128xf32> to vector<32x128xf32>
    %94 = arith.addf %92, %93 : vector<32x128xf32>
    %cst_36 = arith.constant 0.000000e+00 : f32
    %95 = vector.broadcast %cst_36 : f32 to vector<32x128xf32>
    %96 = arith.maximumf %94, %95 : vector<32x128xf32>
    %97 = vector.shape_cast %96 : vector<32x128xf32> to vector<2x16x128xf32>
    %98 = vector.shape_cast %97 : vector<2x16x128xf32> to vector<32x128xf32>
    %99 = arith.truncf %98 : vector<32x128xf32> to vector<32x128xbf16>
    %c1_37 = arith.constant 1 : index
    %c0_38 = arith.constant 0 : index
    %c0_39 = arith.constant 0 : index
    %100 = vector.load %arg4[%c1_37, %c0_38, %c0_39] : memref<3x128x128xbf16, #tpu.memory_space<vmem>>, vector<1x128x128xbf16>
    %101 = vector.shape_cast %100 : vector<1x128x128xbf16> to vector<128x128xbf16>
    %cst_40 = arith.constant dense<0.000000e+00> : vector<32x128xf32>
    %102 = tpu.matmul %99, %101, %cst_40 {dimension_numbers = #tpu.dot_dimension_numbers<[1], [0], [0], [1], [0, 0, 1, 1], [], []>} : vector<32x128xbf16>, vector<128x128xbf16>, vector<32x128xf32> -> vector<32x128xf32>
    %cst_41 = arith.constant 0.000000e+00 : f32
    %103 = vector.broadcast %cst_41 : f32 to vector<2x1x128xf32>
    %104 = vector.extract_strided_slice %97 {offsets = [0, 0, 0], sizes = [2, 15, 128], strides = [1, 1, 1]} : vector<2x16x128xf32> to vector<2x15x128xf32>
    %105 = tpu.concatenate %103, %104 in 1 : vector<2x1x128xf32>, vector<2x15x128xf32> -> vector<2x16x128xf32>
    %106 = vector.shape_cast %105 : vector<2x16x128xf32> to vector<32x128xf32>
    %107 = arith.truncf %106 : vector<32x128xf32> to vector<32x128xbf16>
    %c0_42 = arith.constant 0 : index
    %c0_43 = arith.constant 0 : index
    %c0_44 = arith.constant 0 : index
    %108 = vector.load %arg4[%c0_42, %c0_43, %c0_44] : memref<3x128x128xbf16, #tpu.memory_space<vmem>>, vector<1x128x128xbf16>
    %109 = vector.shape_cast %108 : vector<1x128x128xbf16> to vector<128x128xbf16>
    %cst_45 = arith.constant dense<0.000000e+00> : vector<32x128xf32>
    %110 = tpu.matmul %107, %109, %cst_45 {dimension_numbers = #tpu.dot_dimension_numbers<[1], [0], [0], [1], [0, 0, 1, 1], [], []>} : vector<32x128xbf16>, vector<128x128xbf16>, vector<32x128xf32> -> vector<32x128xf32>
    %111 = arith.addf %102, %110 : vector<32x128xf32>
    %cst_46 = arith.constant 0.000000e+00 : f32
    %112 = vector.broadcast %cst_46 : f32 to vector<2x1x128xf32>
    %113 = vector.extract_strided_slice %97 {offsets = [0, 1, 0], sizes = [2, 15, 128], strides = [1, 1, 1]} : vector<2x16x128xf32> to vector<2x15x128xf32>
    %114 = tpu.concatenate %113, %112 in 1 : vector<2x15x128xf32>, vector<2x1x128xf32> -> vector<2x16x128xf32>
    %115 = vector.shape_cast %114 : vector<2x16x128xf32> to vector<32x128xf32>
    %116 = arith.truncf %115 : vector<32x128xf32> to vector<32x128xbf16>
    %c2_47 = arith.constant 2 : index
    %c0_48 = arith.constant 0 : index
    %c0_49 = arith.constant 0 : index
    %117 = vector.load %arg4[%c2_47, %c0_48, %c0_49] : memref<3x128x128xbf16, #tpu.memory_space<vmem>>, vector<1x128x128xbf16>
    %118 = vector.shape_cast %117 : vector<1x128x128xbf16> to vector<128x128xbf16>
    %cst_50 = arith.constant dense<0.000000e+00> : vector<32x128xf32>
    %119 = tpu.matmul %116, %118, %cst_50 {dimension_numbers = #tpu.dot_dimension_numbers<[1], [0], [0], [1], [0, 0, 1, 1], [], []>} : vector<32x128xbf16>, vector<128x128xbf16>, vector<32x128xf32> -> vector<32x128xf32>
    %120 = arith.addf %111, %119 : vector<32x128xf32>
    %121 = tpu.iota {dimensions = array<i32: 0>} : vector<128x8xi32>
    %c8_i32_51 = arith.constant 8 : i32
    %c0_i32_52 = arith.constant 0 : i32
    %122 = arith.cmpi eq, %c8_i32_51, %c0_i32_52 : i32
    %c1_i32_53 = arith.constant 1 : i32
    %123 = arith.select %122, %c1_i32_53, %c8_i32_51 : i32
    %124 = vector.broadcast %123 : i32 to vector<128x8xi32>
    %125 = arith.remsi %121, %124 : vector<128x8xi32>
    %c0_i32_54 = arith.constant 0 : i32
    %126 = vector.broadcast %c0_i32_54 : i32 to vector<128x8xi32>
    %127 = arith.cmpi ne, %125, %126 : vector<128x8xi32>
    %c0_i32_55 = arith.constant 0 : i32
    %128 = vector.broadcast %c0_i32_55 : i32 to vector<128x8xi32>
    %129 = arith.cmpi slt, %125, %128 : vector<128x8xi32>
    %c0_i32_56 = arith.constant 0 : i32
    %130 = arith.cmpi slt, %123, %c0_i32_56 : i32
    %131 = vector.broadcast %130 : i1 to vector<128x8xi1>
    %132 = vector.broadcast %131 : vector<128x8xi1> to vector<128x8xi1>
    %133 = arith.xori %129, %132 : vector<128x8xi1>
    %134 = arith.andi %133, %127 : vector<128x8xi1>
    %135 = vector.broadcast %123 : i32 to vector<128x8xi32>
    %136 = arith.addi %125, %135 : vector<128x8xi32>
    %137 = arith.select %134, %136, %125 : vector<128x8xi1>, vector<128x8xi32>
    %138 = tpu.iota {dimensions = array<i32: 1>} : vector<128x8xi32>
    %139 = arith.cmpi eq, %137, %138 : vector<128x8xi32>
    %140 = arith.extui %139 : vector<128x8xi1> to vector<128x8xi32>
    %141 = arith.sitofp %140 : vector<128x8xi32> to vector<128x8xf32>
    %142 = tpu.iota {dimensions = array<i32: 0>} : vector<8x128xi32>
    %143 = tpu.iota {dimensions = array<i32: 1>} : vector<8x128xi32>
    %c8_i32_57 = arith.constant 8 : i32
    %c0_i32_58 = arith.constant 0 : i32
    %144 = arith.cmpi eq, %c8_i32_57, %c0_i32_58 : i32
    %c1_i32_59 = arith.constant 1 : i32
    %145 = arith.select %144, %c1_i32_59, %c8_i32_57 : i32
    %146 = vector.broadcast %145 : i32 to vector<8x128xi32>
    %147 = arith.remsi %143, %146 : vector<8x128xi32>
    %c0_i32_60 = arith.constant 0 : i32
    %148 = vector.broadcast %c0_i32_60 : i32 to vector<8x128xi32>
    %149 = arith.cmpi ne, %147, %148 : vector<8x128xi32>
    %c0_i32_61 = arith.constant 0 : i32
    %150 = vector.broadcast %c0_i32_61 : i32 to vector<8x128xi32>
    %151 = arith.cmpi slt, %147, %150 : vector<8x128xi32>
    %c0_i32_62 = arith.constant 0 : i32
    %152 = arith.cmpi slt, %145, %c0_i32_62 : i32
    %153 = vector.broadcast %152 : i1 to vector<8x128xi1>
    %154 = vector.broadcast %153 : vector<8x128xi1> to vector<8x128xi1>
    %155 = arith.xori %151, %154 : vector<8x128xi1>
    %156 = arith.andi %155, %149 : vector<8x128xi1>
    %157 = vector.broadcast %145 : i32 to vector<8x128xi32>
    %158 = arith.addi %147, %157 : vector<8x128xi32>
    %159 = arith.select %156, %158, %147 : vector<8x128xi1>, vector<8x128xi32>
    %160 = arith.cmpi eq, %142, %159 : vector<8x128xi32>
    %161 = arith.extui %160 : vector<8x128xi1> to vector<8x128xi32>
    %162 = arith.sitofp %161 : vector<8x128xi32> to vector<8x128xf32>
    %cst_63 = arith.constant dense<0.000000e+00> : vector<128xf32>
    %163 = vector.multi_reduction <add>, %120, %cst_63 [0] : vector<32x128xf32> to vector<128xf32>
    %164 = vector.shape_cast %163 : vector<128xf32> to vector<1x128xf32>
    %cst_64 = arith.constant dense<0.000000e+00> : vector<1x8xf32>
    %165 = tpu.matmul %164, %141, %cst_64 {dimension_numbers = #tpu.dot_dimension_numbers<[1], [0], [0], [1], [0, 0, 1, 1], [], []>} : vector<1x128xf32>, vector<128x8xf32>, vector<1x8xf32> -> vector<1x8xf32>
    %166 = arith.mulf %120, %120 : vector<32x128xf32>
    %cst_65 = arith.constant dense<0.000000e+00> : vector<128xf32>
    %167 = vector.multi_reduction <add>, %166, %cst_65 [0] : vector<32x128xf32> to vector<128xf32>
    %168 = vector.shape_cast %167 : vector<128xf32> to vector<1x128xf32>
    %cst_66 = arith.constant dense<0.000000e+00> : vector<1x8xf32>
    %169 = tpu.matmul %168, %141, %cst_66 {dimension_numbers = #tpu.dot_dimension_numbers<[1], [0], [0], [1], [0, 0, 1, 1], [], []>} : vector<1x128xf32>, vector<128x8xf32>, vector<1x8xf32> -> vector<1x8xf32>
    %cst_67 = arith.constant 5.120000e+02 : f32
    %170 = vector.broadcast %cst_67 : f32 to vector<1x8xf32>
    %171 = arith.divf %165, %170 : vector<1x8xf32>
    %cst_68 = arith.constant 5.120000e+02 : f32
    %172 = vector.broadcast %cst_68 : f32 to vector<1x8xf32>
    %173 = arith.divf %169, %172 : vector<1x8xf32>
    %174 = arith.mulf %171, %171 : vector<1x8xf32>
    %175 = arith.subf %173, %174 : vector<1x8xf32>
    %cst_69 = arith.constant 0.000000e+00 : f32
    %176 = vector.broadcast %cst_69 : f32 to vector<1x8xf32>
    %177 = arith.maximumf %175, %176 : vector<1x8xf32>
    %c0_70 = arith.constant 0 : index
    %c0_71 = arith.constant 0 : index
    %178 = vector.load %arg5[%c0_70, %c0_71] : memref<1x8xf32, #tpu.memory_space<vmem>>, vector<1x8xf32>
    %cst_72 = arith.constant 9.99999974E-6 : f32
    %179 = vector.broadcast %cst_72 : f32 to vector<1x8xf32>
    %180 = arith.addf %177, %179 : vector<1x8xf32>
    %181 = math.rsqrt %180 : vector<1x8xf32>
    %182 = arith.mulf %178, %181 : vector<1x8xf32>
    %c0_73 = arith.constant 0 : index
    %c0_74 = arith.constant 0 : index
    %183 = vector.load %arg6[%c0_73, %c0_74] : memref<1x8xf32, #tpu.memory_space<vmem>>, vector<1x8xf32>
    %184 = arith.mulf %171, %182 : vector<1x8xf32>
    %185 = arith.subf %183, %184 : vector<1x8xf32>
    %cst_75 = arith.constant dense<0.000000e+00> : vector<1x128xf32>
    %186 = tpu.matmul %182, %162, %cst_75 {dimension_numbers = #tpu.dot_dimension_numbers<[1], [0], [0], [1], [0, 0, 1, 1], [], []>} : vector<1x8xf32>, vector<8x128xf32>, vector<1x128xf32> -> vector<1x128xf32>
    %cst_76 = arith.constant dense<0.000000e+00> : vector<1x128xf32>
    %187 = tpu.matmul %185, %162, %cst_76 {dimension_numbers = #tpu.dot_dimension_numbers<[1], [0], [0], [1], [0, 0, 1, 1], [], []>} : vector<1x8xf32>, vector<8x128xf32>, vector<1x128xf32> -> vector<1x128xf32>
    %188 = vector.broadcast %186 : vector<1x128xf32> to vector<32x128xf32>
    %189 = arith.mulf %120, %188 : vector<32x128xf32>
    %190 = vector.broadcast %187 : vector<1x128xf32> to vector<32x128xf32>
    %191 = arith.addf %189, %190 : vector<32x128xf32>
    %cst_77 = arith.constant 0.000000e+00 : f32
    %192 = vector.broadcast %cst_77 : f32 to vector<32x128xf32>
    %193 = arith.maximumf %191, %192 : vector<32x128xf32>
    %c0_78 = arith.constant 0 : index
    %c0_79 = arith.constant 0 : index
    %c0_80 = arith.constant 0 : index
    %194 = vector.load %arg0[%c0_78, %c0_79, %c0_80] : memref<2x16x64xf32, #tpu.memory_space<vmem>>, vector<2x16x64xf32>
    %195 = vector.shape_cast %194 : vector<2x16x64xf32> to vector<32x64xf32>
    %196 = arith.truncf %195 : vector<32x64xf32> to vector<32x64xbf16>
    %c1_81 = arith.constant 1 : index
    %c0_82 = arith.constant 0 : index
    %c0_83 = arith.constant 0 : index
    %197 = vector.load %arg7[%c1_81, %c0_82, %c0_83] : memref<3x64x128xbf16, #tpu.memory_space<vmem>>, vector<1x64x128xbf16>
    %198 = vector.shape_cast %197 : vector<1x64x128xbf16> to vector<64x128xbf16>
    %cst_84 = arith.constant dense<0.000000e+00> : vector<32x128xf32>
    %199 = tpu.matmul %196, %198, %cst_84 {dimension_numbers = #tpu.dot_dimension_numbers<[1], [0], [0], [1], [0, 0, 1, 1], [], []>} : vector<32x64xbf16>, vector<64x128xbf16>, vector<32x128xf32> -> vector<32x128xf32>
    %cst_85 = arith.constant 0.000000e+00 : f32
    %200 = vector.broadcast %cst_85 : f32 to vector<2x1x64xf32>
    %201 = vector.extract_strided_slice %194 {offsets = [0, 0, 0], sizes = [2, 15, 64], strides = [1, 1, 1]} : vector<2x16x64xf32> to vector<2x15x64xf32>
    %202 = tpu.concatenate %200, %201 in 1 : vector<2x1x64xf32>, vector<2x15x64xf32> -> vector<2x16x64xf32>
    %203 = vector.shape_cast %202 : vector<2x16x64xf32> to vector<32x64xf32>
    %204 = arith.truncf %203 : vector<32x64xf32> to vector<32x64xbf16>
    %c0_86 = arith.constant 0 : index
    %c0_87 = arith.constant 0 : index
    %c0_88 = arith.constant 0 : index
    %205 = vector.load %arg7[%c0_86, %c0_87, %c0_88] : memref<3x64x128xbf16, #tpu.memory_space<vmem>>, vector<1x64x128xbf16>
    %206 = vector.shape_cast %205 : vector<1x64x128xbf16> to vector<64x128xbf16>
    %cst_89 = arith.constant dense<0.000000e+00> : vector<32x128xf32>
    %207 = tpu.matmul %204, %206, %cst_89 {dimension_numbers = #tpu.dot_dimension_numbers<[1], [0], [0], [1], [0, 0, 1, 1], [], []>} : vector<32x64xbf16>, vector<64x128xbf16>, vector<32x128xf32> -> vector<32x128xf32>
    %208 = arith.addf %199, %207 : vector<32x128xf32>
    %cst_90 = arith.constant 0.000000e+00 : f32
    %209 = vector.broadcast %cst_90 : f32 to vector<2x1x64xf32>
    %210 = vector.extract_strided_slice %194 {offsets = [0, 1, 0], sizes = [2, 15, 64], strides = [1, 1, 1]} : vector<2x16x64xf32> to vector<2x15x64xf32>
    %211 = tpu.concatenate %210, %209 in 1 : vector<2x15x64xf32>, vector<2x1x64xf32> -> vector<2x16x64xf32>
    %212 = vector.shape_cast %211 : vector<2x16x64xf32> to vector<32x64xf32>
    %213 = arith.truncf %212 : vector<32x64xf32> to vector<32x64xbf16>
    %c2_91 = arith.constant 2 : index
    %c0_92 = arith.constant 0 : index
    %c0_93 = arith.constant 0 : index
    %214 = vector.load %arg7[%c2_91, %c0_92, %c0_93] : memref<3x64x128xbf16, #tpu.memory_space<vmem>>, vector<1x64x128xbf16>
    %215 = vector.shape_cast %214 : vector<1x64x128xbf16> to vector<64x128xbf16>
    %cst_94 = arith.constant dense<0.000000e+00> : vector<32x128xf32>
    %216 = tpu.matmul %213, %215, %cst_94 {dimension_numbers = #tpu.dot_dimension_numbers<[1], [0], [0], [1], [0, 0, 1, 1], [], []>} : vector<32x64xbf16>, vector<64x128xbf16>, vector<32x128xf32> -> vector<32x128xf32>
    %217 = arith.addf %208, %216 : vector<32x128xf32>
    %218 = tpu.iota {dimensions = array<i32: 0>} : vector<128x8xi32>
    %c8_i32_95 = arith.constant 8 : i32
    %c0_i32_96 = arith.constant 0 : i32
    %219 = arith.cmpi eq, %c8_i32_95, %c0_i32_96 : i32
    %c1_i32_97 = arith.constant 1 : i32
    %220 = arith.select %219, %c1_i32_97, %c8_i32_95 : i32
    %221 = vector.broadcast %220 : i32 to vector<128x8xi32>
    %222 = arith.remsi %218, %221 : vector<128x8xi32>
    %c0_i32_98 = arith.constant 0 : i32
    %223 = vector.broadcast %c0_i32_98 : i32 to vector<128x8xi32>
    %224 = arith.cmpi ne, %222, %223 : vector<128x8xi32>
    %c0_i32_99 = arith.constant 0 : i32
    %225 = vector.broadcast %c0_i32_99 : i32 to vector<128x8xi32>
    %226 = arith.cmpi slt, %222, %225 : vector<128x8xi32>
    %c0_i32_100 = arith.constant 0 : i32
    %227 = arith.cmpi slt, %220, %c0_i32_100 : i32
    %228 = vector.broadcast %227 : i1 to vector<128x8xi1>
    %229 = vector.broadcast %228 : vector<128x8xi1> to vector<128x8xi1>
    %230 = arith.xori %226, %229 : vector<128x8xi1>
    %231 = arith.andi %230, %224 : vector<128x8xi1>
    %232 = vector.broadcast %220 : i32 to vector<128x8xi32>
    %233 = arith.addi %222, %232 : vector<128x8xi32>
    %234 = arith.select %231, %233, %222 : vector<128x8xi1>, vector<128x8xi32>
    %235 = tpu.iota {dimensions = array<i32: 1>} : vector<128x8xi32>
    %236 = arith.cmpi eq, %234, %235 : vector<128x8xi32>
    %237 = arith.extui %236 : vector<128x8xi1> to vector<128x8xi32>
    %238 = arith.sitofp %237 : vector<128x8xi32> to vector<128x8xf32>
    %239 = tpu.iota {dimensions = array<i32: 0>} : vector<8x128xi32>
    %240 = tpu.iota {dimensions = array<i32: 1>} : vector<8x128xi32>
    %c8_i32_101 = arith.constant 8 : i32
    %c0_i32_102 = arith.constant 0 : i32
    %241 = arith.cmpi eq, %c8_i32_101, %c0_i32_102 : i32
    %c1_i32_103 = arith.constant 1 : i32
    %242 = arith.select %241, %c1_i32_103, %c8_i32_101 : i32
    %243 = vector.broadcast %242 : i32 to vector<8x128xi32>
    %244 = arith.remsi %240, %243 : vector<8x128xi32>
    %c0_i32_104 = arith.constant 0 : i32
    %245 = vector.broadcast %c0_i32_104 : i32 to vector<8x128xi32>
    %246 = arith.cmpi ne, %244, %245 : vector<8x128xi32>
    %c0_i32_105 = arith.constant 0 : i32
    %247 = vector.broadcast %c0_i32_105 : i32 to vector<8x128xi32>
    %248 = arith.cmpi slt, %244, %247 : vector<8x128xi32>
    %c0_i32_106 = arith.constant 0 : i32
    %249 = arith.cmpi slt, %242, %c0_i32_106 : i32
    %250 = vector.broadcast %249 : i1 to vector<8x128xi1>
    %251 = vector.broadcast %250 : vector<8x128xi1> to vector<8x128xi1>
    %252 = arith.xori %248, %251 : vector<8x128xi1>
    %253 = arith.andi %252, %246 : vector<8x128xi1>
    %254 = vector.broadcast %242 : i32 to vector<8x128xi32>
    %255 = arith.addi %244, %254 : vector<8x128xi32>
    %256 = arith.select %253, %255, %244 : vector<8x128xi1>, vector<8x128xi32>
    %257 = arith.cmpi eq, %239, %256 : vector<8x128xi32>
    %258 = arith.extui %257 : vector<8x128xi1> to vector<8x128xi32>
    %259 = arith.sitofp %258 : vector<8x128xi32> to vector<8x128xf32>
    %cst_107 = arith.constant dense<0.000000e+00> : vector<128xf32>
    %260 = vector.multi_reduction <add>, %217, %cst_107 [0] : vector<32x128xf32> to vector<128xf32>
    %261 = vector.shape_cast %260 : vector<128xf32> to vector<1x128xf32>
    %cst_108 = arith.constant dense<0.000000e+00> : vector<1x8xf32>
    %262 = tpu.matmul %261, %238, %cst_108 {dimension_numbers = #tpu.dot_dimension_numbers<[1], [0], [0], [1], [0, 0, 1, 1], [], []>} : vector<1x128xf32>, vector<128x8xf32>, vector<1x8xf32> -> vector<1x8xf32>
    %263 = arith.mulf %217, %217 : vector<32x128xf32>
    %cst_109 = arith.constant dense<0.000000e+00> : vector<128xf32>
    %264 = vector.multi_reduction <add>, %263, %cst_109 [0] : vector<32x128xf32> to vector<128xf32>
    %265 = vector.shape_cast %264 : vector<128xf32> to vector<1x128xf32>
    %cst_110 = arith.constant dense<0.000000e+00> : vector<1x8xf32>
    %266 = tpu.matmul %265, %238, %cst_110 {dimension_numbers = #tpu.dot_dimension_numbers<[1], [0], [0], [1], [0, 0, 1, 1], [], []>} : vector<1x128xf32>, vector<128x8xf32>, vector<1x8xf32> -> vector<1x8xf32>
    %cst_111 = arith.constant 5.120000e+02 : f32
    %267 = vector.broadcast %cst_111 : f32 to vector<1x8xf32>
    %268 = arith.divf %262, %267 : vector<1x8xf32>
    %cst_112 = arith.constant 5.120000e+02 : f32
    %269 = vector.broadcast %cst_112 : f32 to vector<1x8xf32>
    %270 = arith.divf %266, %269 : vector<1x8xf32>
    %271 = arith.mulf %268, %268 : vector<1x8xf32>
    %272 = arith.subf %270, %271 : vector<1x8xf32>
    %cst_113 = arith.constant 0.000000e+00 : f32
    %273 = vector.broadcast %cst_113 : f32 to vector<1x8xf32>
    %274 = arith.maximumf %272, %273 : vector<1x8xf32>
    %c0_114 = arith.constant 0 : index
    %c0_115 = arith.constant 0 : index
    %275 = vector.load %arg8[%c0_114, %c0_115] : memref<1x8xf32, #tpu.memory_space<vmem>>, vector<1x8xf32>
    %cst_116 = arith.constant 9.99999974E-6 : f32
    %276 = vector.broadcast %cst_116 : f32 to vector<1x8xf32>
    %277 = arith.addf %274, %276 : vector<1x8xf32>
    %278 = math.rsqrt %277 : vector<1x8xf32>
    %279 = arith.mulf %275, %278 : vector<1x8xf32>
    %c0_117 = arith.constant 0 : index
    %c0_118 = arith.constant 0 : index
    %280 = vector.load %arg9[%c0_117, %c0_118] : memref<1x8xf32, #tpu.memory_space<vmem>>, vector<1x8xf32>
    %281 = arith.mulf %268, %279 : vector<1x8xf32>
    %282 = arith.subf %280, %281 : vector<1x8xf32>
    %cst_119 = arith.constant dense<0.000000e+00> : vector<1x128xf32>
    %283 = tpu.matmul %279, %259, %cst_119 {dimension_numbers = #tpu.dot_dimension_numbers<[1], [0], [0], [1], [0, 0, 1, 1], [], []>} : vector<1x8xf32>, vector<8x128xf32>, vector<1x128xf32> -> vector<1x128xf32>
    %cst_120 = arith.constant dense<0.000000e+00> : vector<1x128xf32>
    %284 = tpu.matmul %282, %259, %cst_120 {dimension_numbers = #tpu.dot_dimension_numbers<[1], [0], [0], [1], [0, 0, 1, 1], [], []>} : vector<1x8xf32>, vector<8x128xf32>, vector<1x128xf32> -> vector<1x128xf32>
    %285 = vector.broadcast %283 : vector<1x128xf32> to vector<32x128xf32>
    %286 = arith.mulf %217, %285 : vector<32x128xf32>
    %287 = vector.broadcast %284 : vector<1x128xf32> to vector<32x128xf32>
    %288 = arith.addf %286, %287 : vector<32x128xf32>
    %cst_121 = arith.constant 0.000000e+00 : f32
    %289 = vector.broadcast %cst_121 : f32 to vector<32x128xf32>
    %290 = arith.maximumf %288, %289 : vector<32x128xf32>
    %291 = arith.addf %193, %290 : vector<32x128xf32>
    %c0_122 = arith.constant 0 : index
    %c0_123 = arith.constant 0 : index
    %292 = vector.load %arg10[%c0_122, %c0_123] : memref<32x128xf32, #tpu.memory_space<vmem>>, vector<32x128xf32>
    tpu.vector_store %arg10[%c0_122, %c0_123], %291 {strides = array<i32>} : memref<32x128xf32, #tpu.memory_space<vmem>>, vector<32x128xf32>,
    return
  }
}

</mosaic_0001>

<bundles_post_ra>
// kernel: tpu_custom_call.1
= control target key start
LH: loop header
LB: loop body
LE: loop exit
PB: predicated region body
PF: predicated region fallthrough
CT: control target
= control target key end

     0   :  { %15 = vsyncpa [#allocation3], 0  ;;  %s2715_s0 = inlined_call_operand.hbm [shape: f32[2,16,64], index: 0, kind: input, shape index: {}]   ;;  %s2716_s1 = inlined_call_operand.hbm [shape: bf16[3,64,128], index: 1, kind: input, shape index: {}]   ;;  %s2717_s2 = inlined_call_operand.vmem [shape: f32[1,8], index: 2, kind: input, shape index: {}]   ;;  %s2718_s3 = inlined_call_operand.vmem [shape: f32[1,8], index: 3, kind: input, shape index: {}]   ;;  %s2719_s4 = inlined_call_operand.hbm [shape: bf16[3,128,128], index: 4, kind: input, shape index: {}]   ;;  %s2720_s5 = inlined_call_operand.vmem [shape: f32[1,8], index: 5, kind: input, shape index: {}]   ;;  %s2721_s6 = inlined_call_operand.vmem [shape: f32[1,8], index: 6, kind: input, shape index: {}]   ;;  %s2722_s7 = inlined_call_operand.hbm [shape: bf16[3,64,128], index: 7, kind: input, shape index: {}]   ;;  %s2723_s8 = inlined_call_operand.vmem [shape: f32[1,8], index: 8, kind: input, shape index: {}]   ;;  %s2724_s9 = inlined_call_operand.vmem [shape: f32[1,8], index: 9, kind: input, shape index: {}]   ;;  %s2725_s10 = inlined_call_operand.hbm [shape: f32[32,128], index: 10, kind: output, shape index: {}]  }
   0x1   :  { %16 = vsyncpa [#allocation6], 0 }
   0x2   :  { %17 = vsyncpa [#allocation9], 0  ;;  %s36_s15 = sshll.u32 %s2716_s1, 4  ;;  %s37_s15 = int_to_ptr.hbm [resolvable:$true] %s36_s15 }
   0x3   :  { %18 = vsyncpa [#allocation4], 0  ;;  %s2045_s16 = smov [#allocation5]   ;;  %s23_s20 = sshll.u32 %s2715_s0, 4  ;;  %s24_s20 = int_to_ptr.hbm [resolvable:$true] %s23_s20 }
   0x4   :  { %s38_s17 = sshll.u32 %s2045_s16, 4  ;;  %s2046_s21 = smov 64   ;;  %s39_s17 = int_to_ptr.vmem [resolvable:$true] %s38_s17 }
   0x5   :  { %s2047_s22 = smov 4   ;;  %s2048_s23 = smov [#allocation2]  }
   0x6   :  { %44 = dma.hbm_to_vmem [thread:$0]  %s37_s15, 1536, %s39_s17, [#allocation6], %s2046_s21, %s2046_s21, %s2047_s22  }
   0x7   :  { %s25_s24 = sshll.u32 %s2048_s23, 4  ;;  %s2049_s25 = smov 128   ;;  %s26_s24 = int_to_ptr.vmem [resolvable:$true] %s25_s24 }
   0x8   :  { %s2050_s26 = smov 8   ;;  %s53_s28 = sshll.u32 %s2719_s4, 4  ;;  %s54_s28 = int_to_ptr.hbm [resolvable:$true] %s53_s28 }
   0x9   :  { %31 = dma.hbm_to_vmem [thread:$0]  %s24_s20, 512, %s26_s24, [#allocation3], %s2049_s25, %s2049_s25, %s2050_s26  }
   0xa   :  { %s2051_s29 = smov [#allocation7]   ;;  %s70_s12 = sshll.u32 %s2722_s7, 4  ;;  %s71_s12 = int_to_ptr.hbm [resolvable:$true] %s70_s12 }
   0xb   :  { %s55_s0 = sshll.u32 %s2051_s29, 4  ;;  %s2052_s13 = smov [#allocation8]   ;;  %s56_s0 = int_to_ptr.vmem [resolvable:$true] %s55_s0 }
   0xc   :  { %61 = dma.hbm_to_vmem [thread:$0]  %s54_s28, 3072, %s56_s0, [#allocation6], %s2046_s21, %s2046_s21, %s2047_s22  }
   0xd   :  { %s72_s14 = sshll.u32 %s2052_s13, 4  ;;  %s73_s14 = int_to_ptr.vmem [resolvable:$true] %s72_s14 }
   0xe   :  { %78 = dma.hbm_to_vmem [thread:$0]  %s71_s12, 1536, %s73_s14, [#allocation9], %s2046_s21, %s2046_s21, %s2047_s22  }
   0xf   :  { %2037 = dma.done.wait [#allocation3], 512  }
  0x10   :  { %2038 = vsyncadd [#allocation3], 4294966784 }
  0x11   :  { %2039 = dma.done.wait [#allocation6], 4608  }
  0x12   :  { %2040 = vsyncadd [#allocation6], 4294962688 }
  0x13   :  { %2041 = dma.done.wait [#allocation9], 1536  }
  0x14   :  { %2042 = vsyncadd [#allocation9], 4294965760  ;;  %v1856_v0 = vld [vmem:[#allocation5 + $0x18] sm:$0xff]  ;;  %v1855_v3 = vld [vmem:[#allocation5 + $0x10] sm:$0xff]  ;;  %vm2728_vm0 = vcmask 1040384   ;;  %vm2727_vm1 = vcmask 1046528   ;;  %v318_v38 = vlaneseq }
  0x15   :  { %v1852_v1 = vld [vmem:[#allocation5 + $0x38] sm:$0xff]  ;;  %177 = vmatpush.bf16.msra.mxu0 %v1856_v0  ;;  %v1851_v4 = vld [vmem:[#allocation5 + $0x30] sm:$0xff]  ;;  %v100_v6 = vld [vmem:[#allocation2] sm:$0xff]  ;;  %vm2726_vm2 = vcmask 523264   ;;  %v2053_v47 = vmov 1.0   ;;  %s1491_s23 = sshll.u32 %s2725_s10, 4  ;;  %s1492_s23 = int_to_ptr.hbm [resolvable:$true] %s1491_s23 }
  0x16   :  { %v1860_v2 = vld [vmem:[#allocation5 + $0x58] sm:$0xff]  ;;  %226 = vmatpush.bf16.msra.mxu1 %v1852_v1  ;;  %v1859_v5 = vld [vmem:[#allocation5 + $0x50] sm:$0xff]  ;;  %v101_v7 = vld [vmem:[#allocation2 + $0x8] sm:$0xff]  ;;  %v120_v10 = vrot.slane %v100_v6, 7  ;;  %v242_v13 = vrot.slane %v100_v6, 1  ;;  %v2159_v39 = vshrl.u32 %v318_v38, 7 }
  0x17   :  { %299 = vmatpush.bf16.msra.mxu2 %v1860_v2  ;;  %v1854_v8 = vld [vmem:[#allocation5 + $0x8] sm:$0xff]  ;;  %v121_v11 = vrot.slane %v101_v7, 7  ;;  %v243_v14 = vrot.slane %v101_v7, 1  ;;  %v1853_v15 = vld [vmem:[#allocation5] sm:$0xff]  ;;  %v2133_v23 = vpack.c.bf16 %v101_v7, %v100_v6  ;;  %v102_v25 = vld [vmem:[#allocation2 + $0x10] sm:$0xff]  ;;  %v2162_v42 = vand.u32 127, %v318_v38 }
  0x18   :  { %v1850_v9 = vld [vmem:[#allocation5 + $0x28] sm:$0xff]  ;;  %v1849_v16 = vld [vmem:[#allocation5 + $0x20] sm:$0xff]  ;;  %v130_v18 = vsel %vm2728_vm0, 0.0, %v120_v10  ;;  %v103_v26 = vld [vmem:[#allocation2 + $0x18] sm:$0xff]  ;;  %v123_v27 = vrot.slane %v102_v25, 7  ;;  %v245_v29 = vrot.slane %v102_v25, 1 }
  0x19   :  { %178 = vmatpush.bf16.msra.mxu0 %v1855_v3  ;;  %v1858_v12 = vld [vmem:[#allocation5 + $0x48] sm:$0xff]  ;;  %v122_v17 = vsel %vm2728_vm0, %v120_v10, %v121_v11  ;;  %v1857_v19 = vld [vmem:[#allocation5 + $0x40] sm:$0xff]  ;;  %v244_v20 = vsel %vm2727_vm1, %v242_v13, %v243_v14  ;;  %v252_v21 = vsel %vm2727_vm1, %v243_v14, 0.0  ;;  %v124_v28 = vrot.slane %v103_v26, 7 }
  0x1a   :  { %227 = vmatpush.bf16.msra.mxu1 %v1851_v4  ;;  %v2131_v22 = vpack.c.bf16 %v122_v17, %v130_v18  ;;  %v2135_v24 = vpack.c.bf16 %v252_v21, %v244_v20  ;;  %v246_v30 = vrot.slane %v103_v26, 1  ;;  %v131_v32 = vsel %vm2728_vm0, 0.0, %v123_v27 }
  0x1b   :  { %300 = vmatpush.bf16.msra.mxu2 %v1859_v5  ;;  %v125_v31 = vsel %vm2728_vm0, %v123_v27, %v124_v28  ;;  %v2149_v36 = vpack.c.bf16 %v103_v26, %v102_v25  ;;  %v334_v40 = vadd.s32 120, %v2159_v39  ;;  %v333_v43 = vadd.s32 112, %v2159_v39 }
  0x1c   :  { %v247_v33 = vsel %vm2727_vm1, %v245_v29, %v246_v30  ;;  %v253_v34 = vsel %vm2727_vm1, %v246_v30, 0.0  ;;  %v2147_v35 = vpack.c.bf16 %v125_v31, %v131_v32  ;;  %v332_v46 = vadd.s32 104, %v2159_v39 }
  0x1d   :  { %179 = vmatpush.bf16.msra.mxu0 %v1854_v8  ;;  %v2151_v37 = vpack.c.bf16 %v253_v34, %v247_v33  ;;  %v444_v41 = vand.u32 7, %v334_v40  ;;  %v437_v45 = vand.u32 7, %v333_v43  ;;  %v331_v50 = vadd.s32 96, %v2159_v39 }
  0x1e   :  { %228 = vmatpush.bf16.msra.mxu1 %v1850_v9  ;;  %v430_v49 = vand.u32 7, %v332_v46  ;;  %v330_v53 = vadd.s32 88, %v2159_v39  ;;  %v329_v56 = vadd.s32 80, %v2159_v39  ;;  %v328_v59 = vadd.s32 72, %v2159_v39 }
  0x1f   :  { %301 = vmatpush.bf16.msra.mxu2 %v1858_v12  ;;  %vm2166_vm3 = vcmp.eq.s32.totalorder %v444_v41, %v2162_v42  ;;  %vm2178_vm4 = vcmp.eq.s32.totalorder %v437_v45, %v2162_v42  ;;  %v423_v52 = vand.u32 7, %v331_v50  ;;  %v327_v62 = vadd.s32 64, %v2159_v39 }
  0x20   :  { %1577 = vmatpush.msk.msra.mxu3 %vm2166_vm3, %v2053_v47  ;;  %vm2190_vm5 = vcmp.eq.s32.totalorder %v430_v49, %v2162_v42  ;;  %v416_v55 = vand.u32 7, %v330_v53  ;;  %v409_v58 = vand.u32 7, %v329_v56  ;;  %v402_v61 = vand.u32 7, %v328_v59 }
  0x21   :  { %180 = vmatpush.bf16.msra.mxu0 %v1853_v15  ;;  %vm2202_vm6 = vcmp.eq.s32.totalorder %v423_v52, %v2162_v42  ;;  %v395_v0 = vand.u32 7, %v327_v62  ;;  %v326_v1 = vadd.s32 56, %v2159_v39  ;;  %v2766_v2 = vmov 0 }
  0x22   :  { %229 = vmatpush.bf16.msra.mxu1 %v1849_v16  ;;  %1578 = vmatpush.msk.msra.mxu3 %vm2178_vm4, %v2053_v47  ;;  %vm2214_vm7 = vcmp.eq.s32.totalorder %v416_v55, %v2162_v42  ;;  %vm2226_vm8 = vcmp.eq.s32.totalorder %v409_v58, %v2162_v42  ;;  %vm2238_vm9 = vcmp.eq.s32.totalorder %v402_v61, %v2162_v42  ;;  %v325_v4 = vadd.s32 48, %v2159_v39 }
  0x23   :  { %302 = vmatpush.bf16.msra.mxu2 %v1857_v19  ;;  %vm2250_vm10 = vcmp.eq.s32.totalorder %v395_v0, %v2162_v42  ;;  %v388_v3 = vand.u32 7, %v326_v1  ;;  %v2768_v7 = vmov 0  ;;  %v324_v9 = vadd.s32 40, %v2159_v39 }
  0x24   :  { %1522 = vmatmul.msk.bf16.vlgmr.msra.gmra.mxu0 %vm2726_vm2, %v2131_v22  ;;  %1579 = vmatpush.msk.msra.mxu3 %vm2190_vm5, %v2053_v47  ;;  %v2767_v2 = vsel %vm2250_vm10, 4294967295, %v2766_v2  ;;  %v381_v8 = vand.u32 7, %v325_v4  ;;  %v2770_v10 = vmov 0  ;;  %v323_v12 = vadd.s32 32, %v2159_v39 }
  0x25   :  { %1540 = vmatmul.msk.bf16.vlgmr.msra.gmra.mxu1 %vm2726_vm2, %v2133_v23  ;;  %1593 = vmatpush.msk.msrb.mxu0 %vm2166_vm3, %v2053_v47  ;;  %vm2262_vm11 = vcmp.eq.s32.totalorder %v388_v3, %v2162_v42  ;;  %v374_v11 = vand.u32 7, %v324_v9  ;;  %v2772_v13 = vmov 0  ;;  %v322_v15 = vadd.s32 24, %v2159_v39 }
  0x26   :  { %1558 = vmatmul.msk.bf16.vlgmr.msra.gmra.mxu2 %vm2726_vm2, %v2135_v24  ;;  %1580 = vmatpush.msk.msra.mxu3 %vm2202_vm6, %v2053_v47  ;;  %v2769_v7 = vsel %vm2262_vm11, 4294967295, %v2768_v7  ;;  %vm2274_vm12 = vcmp.eq.s32.totalorder %v381_v8, %v2162_v42  ;;  %v367_v14 = vand.u32 7, %v323_v12  ;;  %v2774_v16 = vmov 0 }
  0x27   :  { %1594 = vmatpush.msk.msrb.mxu0 %vm2178_vm4, %v2053_v47  ;;  %v2771_v10 = vsel %vm2274_vm12, 4294967295, %v2770_v10  ;;  %vm2286_vm13 = vcmp.eq.s32.totalorder %v374_v11, %v2162_v42  ;;  %v360_v17 = vand.u32 7, %v322_v15  ;;  %v321_v18 = vadd.s32 16, %v2159_v39 }
  0x28   :  { %1581 = vmatpush.msk.msra.mxu3 %vm2214_vm7, %v2053_v47  ;;  %v2773_v13 = vsel %vm2286_vm13, 4294967295, %v2772_v13  ;;  %vm2298_vm14 = vcmp.eq.s32.totalorder %v367_v14, %v2162_v42  ;;  %v320_v19 = vadd.s32 8, %v2159_v39  ;;  %v2776_v26 = vmov 0 }
  0x29   :  { %1595 = vmatpush.msk.msrb.mxu0 %vm2190_vm5, %v2053_v47  ;;  %v2775_v16 = vsel %vm2298_vm14, 4294967295, %v2774_v16  ;;  %vm2311_vm15 = vcmp.eq.s32.totalorder %v360_v17, %v2162_v42  ;;  %v353_v27 = vand.u32 7, %v321_v18  ;;  %v339_v29 = vand.u32 7, %v2159_v39 }
  0x2a   :  { %1582 = vmatpush.msk.msra.mxu3 %vm2226_vm8, %v2053_v47  ;;  %v2777_v26 = vsel %vm2311_vm15, 4294967295, %v2776_v26  ;;  %v346_v28 = vand.u32 7, %v320_v19  ;;  %v2778_v30 = vmov 0  ;;  %v2780_v31 = vmov 0 }
  0x2b   :  { %1596 = vmatpush.msk.msrb.mxu0 %vm2202_vm6, %v2053_v47  ;;  %vm2339_vm0 = vcmp.eq.s32.totalorder %v339_v29, %v2162_v42  ;;  %v2782_v32 = vmov 0 }
  0x2c   :  { %1583 = vmatpush.msk.msra.mxu3 %vm2238_vm9, %v2053_v47  ;;  %vm2328_vm1 = vcmp.eq.s32.totalorder %v346_v28, %v2162_v42  ;;  %v2783_v32 = vsel %vm2339_vm0, 4294967295, %v2782_v32  ;;  %v2054_v28 = vmov 512.0  }
  0x2d   :  { %1597 = vmatpush.msk.msrb.mxu0 %vm2214_vm7, %v2053_v47  ;;  %v2781_v31 = vsel %vm2328_vm1, 4294967295, %v2780_v31  ;;  %1909 = vrcp.f32 %v2054_v28 }
  0x2e   :  { %1584 = vmatpush.msk.msra.mxu3 %vm2250_vm10, %v2053_v47 }
  0x2f   :  { %1598 = vmatpush.msk.msrb.mxu0 %vm2226_vm8, %v2053_v47 }
  0x30   :  { %1585 = vmatpush.msk.msra.mxu3 %vm2262_vm11, %v2053_v47 }
  0x31   :  { %1599 = vmatpush.msk.msrb.mxu0 %vm2238_vm9, %v2053_v47 }
  0x32   :  { %1586 = vmatpush.msk.msra.mxu3 %vm2274_vm12, %v2053_v47 }
  0x33   :  { %1600 = vmatpush.msk.msrb.mxu0 %vm2250_vm10, %v2053_v47  ;;  %v1910_v29 = vpop.eup %1909 }
  0x34   :  { %1523 = vmatmul.msk.bf16.gmra.mxu0 %vm2726_vm2, %v2147_v35  ;;  %1587 = vmatpush.msk.msra.mxu3 %vm2286_vm13, %v2053_v47 }
  0x35   :  { %1541 = vmatmul.msk.bf16.gmra.mxu1 %vm2726_vm2, %v2149_v36  ;;  %1601 = vmatpush.msk.msrb.mxu0 %vm2262_vm11, %v2053_v47 }
  0x36   :  { %1559 = vmatmul.msk.bf16.gmra.mxu2 %vm2726_vm2, %v2151_v37  ;;  %1588 = vmatpush.msk.msra.mxu3 %vm2298_vm14, %v2053_v47  ;;  %vm2323_vm2 = vcmp.eq.s32.totalorder %v353_v27, %v2162_v42 }
  0x37   :  { %1602 = vmatpush.msk.msrb.mxu0 %vm2274_vm12, %v2053_v47  ;;  %v2779_v30 = vsel %vm2323_vm2, 4294967295, %v2778_v30 }
  0x38   :  { %1589 = vmatpush.msk.msra.mxu3 %vm2311_vm15, %v2053_v47 }
  0x39   :  { %1603 = vmatpush.msk.msrb.mxu0 %vm2286_vm13, %v2053_v47 }
  0x3a   :  { %1590 = vmatpush.msk.msra.mxu3 %vm2323_vm2, %v2053_v47 }
  0x3b   :  { %1604 = vmatpush.msk.msrb.mxu0 %vm2298_vm14, %v2053_v47 }
  0x3c   :  { %1591 = vmatpush.msk.msra.mxu3 %vm2328_vm1, %v2053_v47 }
  0x3d   :  { %1605 = vmatpush.msk.msrb.mxu0 %vm2311_vm15, %v2053_v47 }
  0x3e   :  { %1592 = vmatpush.msk.msra.mxu3 %vm2339_vm0, %v2053_v47 }
  0x3f   :  { %1606 = vmatpush.msk.msrb.mxu0 %vm2323_vm2, %v2053_v47 }
  0x41   :  { %1607 = vmatpush.msk.msrb.mxu0 %vm2328_vm1, %v2053_v47 }
  0x43   :  { %1608 = vmatpush.msk.msrb.mxu0 %vm2339_vm0, %v2053_v47  ;;  %vm659_vm0 = vweird.f32 %v1910_v29 }
  0xa1   :  { %v182_v5 = vpop.f32.mrf.mxu0 }
  0xa2   :  { %v231_v6 = vpop.f32.mrf.mxu1 }
  0xa3   :  { %v232_v40 = vadd.f32 %v231_v6, %v182_v5 }
  0xa9   :  { %v304_v20 = vpop.f32.mrf.mxu2  ;;  %v184_v21 = vpop.f32.mrf.mxu0 }
  0xaa   :  { %v233_v25 = vpop.f32.mrf.mxu1  ;;  %v2357_v49 = vadd.f32 %v304_v20, %v232_v40  ;;  %v581_v40 = vand.u32 7, %v2162_v42 }
  0xab   :  { %v234_v41 = vadd.f32 %v233_v25, %v184_v21 }
  0xac   :  { %v621_v56 = vmul.f32 %v2357_v49, %v2357_v49  ;;  %vm2377_vm1 = vcmp.eq.s32.totalorder %v2159_v39, %v581_v40  ;;  %v1872_v40 = vld [vmem:[#allocation7 + $0x18] sm:$0xff] }
  0xad   :  { %1611 = vmatpush.msk.msrb.mxu1 %vm2377_vm1, %v2053_v47  ;;  %1609 = vmatpush.msk.msrb.mxu3 %vm2377_vm1, %v2053_v47 }
  0xaf   :  { %1723 = vmatpush.msk.msra.mxu1 %vm2166_vm3, %v2053_v47 }
  0xb1   :  { %v306_v33 = vpop.f32.mrf.mxu2  ;;  %v187_v34 = vpop.f32.mrf.mxu0  ;;  %1724 = vmatpush.msk.msra.mxu1 %vm2178_vm4, %v2053_v47 }
  0xb2   :  { %v236_v38 = vpop.f32.mrf.mxu1  ;;  %v2355_v46 = vadd.f32 %v306_v33, %v234_v41  ;;  %v655_v33 = vmul.f32 512.0, %v1910_v29 }
  0xb3   :  { %v237_v43 = vadd.f32 %v236_v38, %v187_v34  ;;  %1725 = vmatpush.msk.msra.mxu1 %vm2190_vm5, %v2053_v47 }
  0xb4   :  { %v622_v55 = vmul.f32 %v2355_v46, %v2355_v46  ;;  %v592_v58 = vadd.f32 %v2355_v46, %v2357_v49  ;;  %v656_v34 = vsub.f32 1.0, %v655_v33  ;;  %v679_v33 = vld [vmem:[%s2718_s3] sm:$0x1] }
  0xb5   :  { %1726 = vmatpush.msk.msra.mxu1 %vm2202_vm6, %v2053_v47 }
  0xb6   :  { %v625_v0 = vadd.f32 %v622_v55, %v621_v56  ;;  %v657_v38 = vmul.f32 %v1910_v29, %v656_v34  ;;  %v1868_v56 = vld [vmem:[#allocation7 + $0x78] sm:$0xff] }
  0xb7   :  { %1727 = vmatpush.msk.msra.mxu1 %vm2214_vm7, %v2053_v47 }
  0xb8   :  { %v658_v41 = vadd.f32 %v1910_v29, %v657_v38 }
  0xb9   :  { %v309_v45 = vpop.f32.mrf.mxu2  ;;  %v189_v52 = vpop.f32.mrf.mxu0  ;;  %1728 = vmatpush.msk.msra.mxu1 %vm2226_vm8, %v2053_v47 }
  0xba   :  { %v2359_v50 = vadd.f32 %v309_v45, %v237_v43  ;;  %v238_v53 = vpop.f32.mrf.mxu1  ;;  %v2390_v45 = vsel %vm659_vm0, %v1910_v29, %v658_v41  ;;  %v1880_v41 = vld [vmem:[#allocation7 + $0x98] sm:$0xff] }
  0xbb   :  { %v239_v61 = vadd.f32 %v238_v53, %v189_v52  ;;  %1729 = vmatpush.msk.msra.mxu1 %vm2238_vm9, %v2053_v47 }
  0xbc   :  { %v623_v59 = vmul.f32 %v2359_v50, %v2359_v50  ;;  %v593_v1 = vadd.f32 %v592_v58, %v2359_v50  ;;  %v1876_v58 = vld [vmem:[#allocation7 + $0x38] sm:$0xff] }
  0xbd   :  { %844 = vmatpush.bf16.msrb.mxu2 %v1876_v58  ;;  %1730 = vmatpush.msk.msra.mxu1 %vm2250_vm10, %v2053_v47  ;;  %v1861_v58 = vld [vmem:[#allocation7 + $0x40] sm:$0xff] }
  0xbe   :  { %v626_v4 = vadd.f32 %v625_v0, %v623_v59  ;;  %v1884_v59 = vld [vmem:[#allocation7 + $0xb8] sm:$0xff]  ;;  %v1875_v0 = vld [vmem:[#allocation7 + $0x30] sm:$0xff] }
  0xbf   :  { %1009 = vmatpush.bf16.msra.mxu0 %v1884_v59  ;;  %1731 = vmatpush.msk.msra.mxu1 %vm2262_vm11, %v2053_v47  ;;  %vm2743_vm11 = vcmask 64512   ;;  %v1869_v59 = vld [vmem:[#allocation7] sm:$0xff] }
  0xc1   :  { %v311_v62 = vpop.f32.mrf.mxu2  ;;  %845 = vmatpush.bf16.msrb.mxu2 %v1875_v0  ;;  %1732 = vmatpush.msk.msra.mxu1 %vm2274_vm12, %v2053_v47 }
  0xc2   :  { %v2370_v3 = vadd.f32 %v311_v62, %v239_v61  ;;  %v1867_v62 = vld [vmem:[#allocation7 + $0x70] sm:$0xff] }
  0xc3   :  { %1733 = vmatpush.msk.msra.mxu1 %vm2286_vm13, %v2053_v47 }
  0xc4   :  { %v594_v5 = vadd.f32 %v593_v1, %v2370_v3  ;;  %v624_v6 = vmul.f32 %v2370_v3, %v2370_v3  ;;  %v1883_v1 = vld [vmem:[#allocation7 + $0xb0] sm:$0xff] }
  0xc5   :  { %1010 = vmatpush.bf16.msra.mxu0 %v1883_v1  ;;  %1734 = vmatpush.msk.msra.mxu1 %vm2298_vm14, %v2053_v47  ;;  %vm2786_vm14 = vnez %v2781_v31 }
  0xc6   :  { %v595_v8 = vrot.slane %v594_v5, 4  ;;  %v627_v9 = vadd.f32 %v626_v4, %v624_v6  ;;  %v1866_v6 = vld [vmem:[#allocation7 + $0x68] sm:$0xff] }
  0xc7   :  { %1735 = vmatpush.msk.msra.mxu1 %vm2311_vm15, %v2053_v47  ;;  %vm2787_vm15 = vnez %v2783_v32 }
  0xc8   :  { %v628_v11 = vrot.slane %v627_v9, 4  ;;  %v596_v12 = vadd.f32 %v595_v8, %v594_v5  ;;  %v1874_v8 = vld [vmem:[#allocation7 + $0x28] sm:$0xff] }
  0xc9   :  { %846 = vmatpush.bf16.msrb.mxu2 %v1874_v8  ;;  %1736 = vmatpush.msk.msra.mxu1 %vm2323_vm2, %v2053_v47 }
  0xca   :  { %v597_v14 = vrot.slane %v596_v12, 2  ;;  %v629_v15 = vadd.f32 %v628_v11, %v627_v9  ;;  %v1882_v9 = vld [vmem:[#allocation7 + $0xa8] sm:$0xff]  ;;  %v1865_v11 = vld [vmem:[#allocation7 + $0x60] sm:$0xff] }
  0xcb   :  { %1011 = vmatpush.bf16.msra.mxu0 %v1882_v9  ;;  %1737 = vmatpush.msk.msra.mxu1 %vm2786_vm14, %v2053_v47 }
  0xcc   :  { %v598_v17 = vadd.f32 %v597_v14, %v596_v12  ;;  %v630_v18 = vrot.slane %v629_v15, 2  ;;  %v1873_v12 = vld [vmem:[#allocation7 + $0x20] sm:$0xff] }
  0xcd   :  { %v1881_v14 = vld [vmem:[#allocation7 + $0xa0] sm:$0xff]  ;;  %847 = vmatpush.bf16.msrb.mxu2 %v1873_v12  ;;  %1738 = vmatpush.msk.msra.mxu1 %vm2787_vm15, %v2053_v47 }
  0xce   :  { %v599_v19 = vrot.slane %v598_v17, 1  ;;  %v631_v20 = vadd.f32 %v630_v18, %v629_v15 }
  0xcf   :  { %1012 = vmatpush.bf16.msra.mxu0 %v1881_v14 }
  0xd0   :  { %v600_v21 = vadd.f32 %v599_v19, %v598_v17  ;;  %v632_v25 = vrot.slane %v631_v20, 1  ;;  %v1864_v17 = vld [vmem:[#allocation7 + $0x58] sm:$0xff] }
  0xd1   :  { %848 = vmatpush.bf16.msrb.mxu2 %v1872_v40 }
  0xd2   :  { %617 = vmatmul.f32.vlgmr.msra.gmra.mxu3 %v600_v21  ;;  %v633_v27 = vadd.f32 %v632_v25, %v631_v20  ;;  %v666_v25 = vld [vmem:[%s2717_s2] sm:$0x1] }
  0xd3   :  { %911 = vmatpush.bf16.msra.mxu3 %v1868_v56  ;;  %1013 = vmatpush.bf16.msra.mxu0 %v1880_v41  ;;  %v1878_v56 = vld [vmem:[#allocation7 + $0x88] sm:$0xff] }
  0xd4   :  { %650 = vmatmul.f32.vlgmr.msrb.gmra.mxu0 %v633_v27 }
  0xd7   :  { %912 = vmatpush.bf16.msra.mxu3 %v1867_v62 }
  0xdb   :  { %913 = vmatpush.bf16.msra.mxu3 %v1866_v6 }
  0xdf   :  { %914 = vmatpush.bf16.msra.mxu3 %v1865_v11 }
  0xe3   :  { %915 = vmatpush.bf16.msra.mxu3 %v1864_v17 }
 0x151   :  { %v651_v42 = vpop.f32.mrf.mxu0 }
 0x152   :  { %v662_v53 = vmul.f32 %v2390_v45, %v651_v42  ;;  %v1863_v42 = vld [vmem:[#allocation7 + $0x50] sm:$0xff] }
 0x153   :  { %916 = vmatpush.bf16.msra.mxu3 %v1863_v42 }
 0x155   :  { %v618_v52 = vpop.f32.mrf.mxu3 }
 0x156   :  { %v661_v39 = vmul.f32 %v2390_v45, %v618_v52  ;;  %v1871_v52 = vld [vmem:[#allocation7 + $0x10] sm:$0xff] }
 0x157   :  { %849 = vmatpush.bf16.msrb.mxu2 %v1871_v52 }
 0x158   :  { %v663_v55 = vmul.f32 %v661_v39, %v661_v39 }
 0x15a   :  { %v664_v61 = vsub.f32 %v662_v53, %v663_v55  ;;  %v1879_v53 = vld [vmem:[#allocation7 + $0x90] sm:$0xff]  ;;  %v1862_v55 = vld [vmem:[#allocation7 + $0x48] sm:$0xff] }
 0x15b   :  { %1014 = vmatpush.bf16.msra.mxu0 %v1879_v53  ;;  %917 = vmatpush.bf16.msra.mxu3 %v1862_v55 }
 0x15c   :  { %v665_v4 = vmax.f32 %v664_v61, 0.0  ;;  %v1877_v61 = vld [vmem:[#allocation7 + $0x80] sm:$0xff] }
 0x15e   :  { %v667_v5 = vadd.f32 1e-05, %v665_v4 }
 0x15f   :  { %1015 = vmatpush.bf16.msra.mxu0 %v1878_v56  ;;  %918 = vmatpush.bf16.msra.mxu3 %v1861_v58 }
 0x160   :  { %1911 = vrsqrt.f32 %v667_v5  ;;  %vm674_vm12 = vweird.f32 %v667_v5 }
 0x163   :  { %1016 = vmatpush.bf16.msra.mxu0 %v1877_v61 }
 0x166   :  { %v1912_v15 = vpop.eup %1911 }
 0x167   :  { %v669_v18 = vmul.f32 %v1912_v15, %v667_v5  ;;  %vm675_vm0 = vweird.f32 %v1912_v15  ;;  %1813 = vmatpush.msk.msrb.mxu0 %vm2166_vm3, %v2053_v47 }
 0x168   :  { %vm676_vm13 = vmor %vm674_vm12, %vm675_vm0  ;;  %vm2788_vm12 = vnez %v2769_v7  ;;  %vm2790_vm0 = vnez %v2773_v13 }
 0x169   :  { %v670_v19 = vmul.f32 %v1912_v15, %v669_v18  ;;  %1814 = vmatpush.msk.msrb.mxu0 %vm2178_vm4, %v2053_v47 }
 0x16b   :  { %v671_v20 = vmul.f32 0.5, %v670_v19  ;;  %1815 = vmatpush.msk.msrb.mxu0 %vm2190_vm5, %v2053_v47 }
 0x16d   :  { %v672_v21 = vsub.f32 1.5, %v671_v20  ;;  %1816 = vmatpush.msk.msrb.mxu0 %vm2202_vm6, %v2053_v47 }
 0x16f   :  { %v673_v27 = vmul.f32 %v1912_v15, %v672_v21  ;;  %1817 = vmatpush.msk.msrb.mxu0 %vm2214_vm7, %v2053_v47 }
 0x171   :  { %v677_v28 = vsel %vm676_vm13, %v1912_v15, %v673_v27  ;;  %1818 = vmatpush.msk.msrb.mxu0 %vm2226_vm8, %v2053_v47  ;;  %vm2789_vm13 = vnez %v2771_v10 }
 0x172   :  { %v678_v29 = vmul.f32 %v677_v28, %v666_v25 }
 0x173   :  { %1819 = vmatpush.msk.msrb.mxu0 %vm2238_vm9, %v2053_v47 }
 0x174   :  { %v680_v34 = vmul.f32 %v678_v29, %v661_v39  ;;  %1610 = vmatmul.msk.f32.vlgmr.msrb.gmra.mxu3 %vm2743_vm11, %v678_v29  ;;  %v1870_v39 = vld [vmem:[#allocation7 + $0x8] sm:$0xff] }
 0x175   :  { %850 = vmatpush.bf16.msrb.mxu2 %v1870_v39  ;;  %1820 = vmatpush.msk.msrb.mxu0 %vm2250_vm10, %v2053_v47 }
 0x176   :  { %v681_v38 = vsub.f32 %v679_v33, %v680_v34 }
 0x177   :  { %1821 = vmatpush.msk.msrb.mxu0 %vm2788_vm12, %v2053_v47 }
 0x178   :  { %1612 = vmatmul.msk.f32.vlgmr.msrb.gmra.mxu1 %vm2743_vm11, %v681_v38  ;;  %vm2791_vm11 = vnez %v2775_v16 }
 0x179   :  { %1755 = vmatpush.msk.msrb.mxu1 %vm2377_vm1, %v2053_v47  ;;  %851 = vmatpush.bf16.msrb.mxu2 %v1869_v59 }
 0x17a   :  { %1822 = vmatpush.msk.msrb.mxu0 %vm2789_vm13, %v2053_v47 }
 0x17c   :  { %1823 = vmatpush.msk.msrb.mxu0 %vm2790_vm0, %v2053_v47 }
 0x17d   :  { %1739 = vmatpush.msk.msra.mxu2 %vm2166_vm3, %v2053_v47 }
 0x17e   :  { %1824 = vmatpush.msk.msrb.mxu0 %vm2791_vm11, %v2053_v47 }
 0x17f   :  { %1740 = vmatpush.msk.msra.mxu2 %vm2178_vm4, %v2053_v47 }
 0x181   :  { %1741 = vmatpush.msk.msra.mxu2 %vm2190_vm5, %v2053_v47 }
 0x183   :  { %1742 = vmatpush.msk.msra.mxu2 %vm2202_vm6, %v2053_v47 }
 0x185   :  { %1743 = vmatpush.msk.msra.mxu2 %vm2214_vm7, %v2053_v47 }
 0x187   :  { %1744 = vmatpush.msk.msra.mxu2 %vm2226_vm8, %v2053_v47 }
 0x189   :  { %1745 = vmatpush.msk.msra.mxu2 %vm2238_vm9, %v2053_v47 }
 0x18b   :  { %1746 = vmatpush.msk.msra.mxu2 %vm2250_vm10, %v2053_v47 }
 0x18d   :  { %1747 = vmatpush.msk.msra.mxu2 %vm2788_vm12, %v2053_v47 }
 0x18f   :  { %1748 = vmatpush.msk.msra.mxu2 %vm2789_vm13, %v2053_v47  ;;  %vm2792_vm13 = vnez %v2777_v26 }
 0x190   :  { %1825 = vmatpush.msk.msrb.mxu0 %vm2792_vm13, %v2053_v47 }
 0x191   :  { %1749 = vmatpush.msk.msra.mxu2 %vm2790_vm0, %v2053_v47 }
 0x192   :  { %1826 = vmatpush.msk.msrb.mxu0 %vm2323_vm2, %v2053_v47 }
 0x193   :  { %1750 = vmatpush.msk.msra.mxu2 %vm2791_vm11, %v2053_v47  ;;  %vm2793_vm11 = vcmask 1040384  }
 0x194   :  { %vm2537_vm0 = vmneg %vm2793_vm11  ;;  %1827 = vmatpush.msk.msrb.mxu0 %vm2786_vm14, %v2053_v47 }
 0x195   :  { %1751 = vmatpush.msk.msra.mxu2 %vm2792_vm13, %v2053_v47  ;;  %vm2798_vm13 = vcmask 1046528  }
 0x196   :  { %1828 = vmatpush.msk.msrb.mxu0 %vm2787_vm15, %v2053_v47  ;;  %vm2801_vm10 = vmmov %vm2798_vm13 }
 0x197   :  { %1752 = vmatpush.msk.msra.mxu2 %vm2323_vm2, %v2053_v47  ;;  %vm2055_vm2 = vmmov 1  }
 0x198   :  { %vm2563_vm12 = vmpackc.low %vm2798_vm13, %vm2055_vm2 }
 0x199   :  { %1753 = vmatpush.msk.msra.mxu2 %vm2786_vm14, %v2053_v47  ;;  %vm2558_vm14 = vmpackc.low %vm2055_vm2, %vm2537_vm0 }
 0x19a   :  { %vm2802_vm2 = vmmov %vm2793_vm11 }
 0x19b   :  { %1754 = vmatpush.msk.msra.mxu2 %vm2787_vm15, %v2053_v47 }
 0x1f5   :  { %v726_v62 = vpop.f32.mrf.mxu1 }
 0x1f6   :  { %v734_v4 = vperm.slane %v726_v62, 0 }
 0x1f7   :  { %v703_v0 = vpop.f32.mrf.mxu3 }
 0x1f8   :  { %v729_v1 = vperm.slane %v703_v0, 0 }
 0x1fa   :  { %v730_v5 = vmul.f32 %v729_v1, %v2357_v49  ;;  %v731_v6 = vmul.f32 %v729_v1, %v2355_v46  ;;  %v732_v12 = vmul.f32 %v729_v1, %v2359_v50  ;;  %v733_v14 = vmul.f32 %v729_v1, %v2370_v3 }
 0x1fc   :  { %v735_v8 = vadd.f32 %v734_v4, %v730_v5  ;;  %v736_v9 = vadd.f32 %v734_v4, %v731_v6  ;;  %v737_v29 = vadd.f32 %v734_v4, %v732_v12  ;;  %v738_v33 = vadd.f32 %v734_v4, %v733_v14 }
 0x1fe   :  { %v739_v49 = vmax.f32 %v735_v8, 0.0  ;;  %v740_v46 = vmax.f32 %v736_v9, 0.0  ;;  %v741_v34 = vmax.f32 %v737_v29, 0.0  ;;  %v742_v38 = vmax.f32 %v738_v33, 0.0 }
 0x200   :  { %v930_v15 = vrot.slane %v739_v49, 1  ;;  %v743_v17 = vpack.c.bf16 %v740_v46, %v739_v49  ;;  %v766_v18 = vrot.slane %v739_v49, 7  ;;  %v767_v19 = vrot.slane %v740_v46, 7 }
 0x201   :  { %v931_v20 = vrot.slane %v740_v46, 1  ;;  %v769_v40 = vrot.slane %v741_v34, 7  ;;  %v770_v41 = vrot.slane %v742_v38, 7  ;;  %v933_v42 = vrot.slane %v741_v34, 1 }
 0x202   :  { %919 = vmatmul.bf16.vlgmr.msra.gmra.mxu3 %v743_v17  ;;  %v768_v50 = vsel %vm2793_vm11, %v766_v18, %v767_v19  ;;  %v934_v52 = vrot.slane %v742_v38, 1  ;;  %v744_v53 = vpack.c.bf16 %v742_v38, %v741_v34 }
 0x203   :  { %v1647_v21 = vpack.c.bf16 %v768_v50, %v766_v18  ;;  %v932_v27 = vsel %vm2801_vm10, %v930_v15, %v931_v20  ;;  %v771_v55 = vsel %vm2802_vm2, %v769_v40, %v770_v41  ;;  %vm2805_vm2 = vcmask 64512  }
 0x204   :  { %v1718_v28 = vpack.c.bf16 %v931_v20, %v932_v27  ;;  %v935_v39 = vsel %vm2801_vm10, %v933_v42, %v934_v52  ;;  %v1651_v56 = vpack.c.bf16 %v771_v55, %v769_v40  ;;  %vm2806_vm10 = vmmov %vm2805_vm2 }
 0x205   :  { %1648 = vmatmul.msk.bf16.vlgmr.msrb.gmra.mxu2 %vm2558_vm14, %v1647_v21  ;;  %v1721_v58 = vpack.c.bf16 %v934_v52, %v935_v39 }
 0x206   :  { %1719 = vmatmul.msk.bf16.vlgmr.msra.gmra.mxu0 %vm2563_vm12, %v1718_v28  ;;  %1757 = vmatpush.msk.msrb.mxu2 %vm2377_vm1, %v2053_v47 }
 0x207   :  { %1845 = vmatpush.msk.msra.mxu0 %vm2377_vm1, %v2053_v47 }
 0x212   :  { %924 = vmatmul.bf16.gmra.mxu3 %v744_v53 }
 0x215   :  { %1652 = vmatmul.msk.bf16.gmra.mxu2 %vm2558_vm14, %v1651_v56  ;;  %vm2803_vm14 = vcmask 523264  }
 0x216   :  { %1722 = vmatmul.msk.bf16.gmra.mxu0 %vm2563_vm12, %v1721_v58  ;;  %vm2804_vm12 = vmmov %vm2803_vm14 }
 0x283   :  { %v1018_v59 = vpop.f32.mrf.mxu0 }
 0x285   :  { %v920_v61 = vpop.f32.mrf.mxu3 }
 0x288   :  { %v853_v62 = vpop.f32.mrf.mxu2 }
 0x289   :  { %v921_v49 = vadd.f32 %v920_v61, %v853_v62 }
 0x28b   :  { %v1020_v1 = vpop.f32.mrf.mxu0  ;;  %v2586_v12 = vadd.f32 %v1018_v59, %v921_v49 }
 0x28d   :  { %v922_v0 = vpop.f32.mrf.mxu3  ;;  %v1061_v19 = vmul.f32 %v2586_v12, %v2586_v12 }
 0x290   :  { %v855_v4 = vpop.f32.mrf.mxu2 }
 0x291   :  { %v923_v6 = vadd.f32 %v922_v0, %v855_v4  ;;  %v1896_v0 = vld [vmem:[#allocation8 + $0x58] sm:$0xff] }
 0x292   :  { %1315 = vmatpush.bf16.msrb.mxu3 %v1896_v0  ;;  %v1892_v4 = vld [vmem:[#allocation8 + $0x18] sm:$0xff] }
 0x293   :  { %v1023_v8 = vpop.f32.mrf.mxu0  ;;  %v2584_v11 = vadd.f32 %v1020_v1, %v923_v6  ;;  %v1895_v1 = vld [vmem:[#allocation8 + $0x50] sm:$0xff]  ;;  %v1888_v6 = vld [vmem:[#allocation8 + $0x38] sm:$0xff] }
 0x295   :  { %v925_v5 = vpop.f32.mrf.mxu3  ;;  %v1062_v15 = vmul.f32 %v2584_v11, %v2584_v11  ;;  %v1032_v20 = vadd.f32 %v2584_v11, %v2586_v12 }
 0x296   :  { %1316 = vmatpush.bf16.msrb.mxu3 %v1895_v1 }
 0x297   :  { %v1065_v25 = vadd.f32 %v1062_v15, %v1061_v19  ;;  %v1890_v15 = vld [vmem:[#allocation8 + $0x8] sm:$0xff] }
 0x298   :  { %v858_v9 = vpop.f32.mrf.mxu2 }
 0x299   :  { %v926_v46 = vadd.f32 %v925_v5, %v858_v9  ;;  %v1891_v9 = vld [vmem:[#allocation8 + $0x10] sm:$0xff] }
 0x29b   :  { %v2588_v14 = vadd.f32 %v1023_v8, %v926_v46  ;;  %v1025_v21 = vpop.f32.mrf.mxu0  ;;  %v1894_v8 = vld [vmem:[#allocation8 + $0x48] sm:$0xff]  ;;  %v1887_v46 = vld [vmem:[#allocation8 + $0x30] sm:$0xff] }
 0x29c   :  { %1317 = vmatpush.bf16.msrb.mxu3 %v1894_v8 }
 0x29d   :  { %v927_v17 = vpop.f32.mrf.mxu3  ;;  %v1063_v50 = vmul.f32 %v2588_v14, %v2588_v14  ;;  %v1033_v27 = vadd.f32 %v1032_v20, %v2588_v14 }
 0x29f   :  { %v1066_v29 = vadd.f32 %v1065_v25, %v1063_v50  ;;  %v1886_v50 = vld [vmem:[#allocation8 + $0x28] sm:$0xff]  ;;  %v1885_v25 = vld [vmem:[#allocation8 + $0x20] sm:$0xff] }
 0x2a0   :  { %v860_v18 = vpop.f32.mrf.mxu2 }
 0x2a1   :  { %v928_v3 = vadd.f32 %v927_v17, %v860_v18  ;;  %v1893_v17 = vld [vmem:[#allocation8 + $0x40] sm:$0xff] }
 0x2a2   :  { %1318 = vmatpush.bf16.msrb.mxu3 %v1893_v17 }
 0x2a3   :  { %v2599_v28 = vadd.f32 %v1025_v21, %v928_v3  ;;  %v1889_v3 = vld [vmem:[#allocation8] sm:$0xff] }
 0x2a5   :  { %v1034_v33 = vadd.f32 %v1033_v27, %v2599_v28  ;;  %v1064_v34 = vmul.f32 %v2599_v28, %v2599_v28  ;;  %1811 = vmatmul.msk.bf16.vlgmr.msrb.gmra.mxu3 %vm2803_vm14, %v2135_v24  ;;  %vm2807_vm14 = vmmov %vm2804_vm12 }
 0x2a7   :  { %v1035_v38 = vrot.slane %v1034_v33, 4  ;;  %v1067_v40 = vadd.f32 %v1066_v29, %v1064_v34 }
 0x2a9   :  { %v1036_v41 = vadd.f32 %v1035_v38, %v1034_v33  ;;  %v1068_v42 = vrot.slane %v1067_v40, 4 }
 0x2ab   :  { %v1037_v52 = vrot.slane %v1036_v41, 2  ;;  %v1069_v53 = vadd.f32 %v1068_v42, %v1067_v40 }
 0x2ad   :  { %v1038_v55 = vadd.f32 %v1037_v52, %v1036_v41  ;;  %v1070_v39 = vrot.slane %v1069_v53, 2  ;;  %v1099_v52 = vld [vmem:[%s2720_s5] sm:$0x1] }
 0x2af   :  { %v1039_v56 = vrot.slane %v1038_v55, 1  ;;  %v1071_v58 = vadd.f32 %v1070_v39, %v1069_v53 }
 0x2b1   :  { %v1040_v59 = vadd.f32 %v1039_v56, %v1038_v55  ;;  %v1072_v61 = vrot.slane %v1071_v58, 1  ;;  %v1112_v55 = vld [vmem:[%s2721_s6] sm:$0x1] }
 0x2b3   :  { %1057 = vmatmul.f32.vlgmr.msra.gmra.mxu1 %v1040_v59  ;;  %v1073_v62 = vadd.f32 %v1072_v61, %v1071_v58 }
 0x2b4   :  { %1220 = vmatpush.bf16.msra.mxu1 %v1892_v4 }
 0x2b5   :  { %1090 = vmatmul.f32.vlgmr.msra.gmra.mxu2 %v1073_v62  ;;  %1812 = vmatmul.msk.bf16.gmra.mxu3 %vm2804_vm12, %v2151_v37 }
 0x2b6   :  { %1263 = vmatpush.bf16.msra.mxu2 %v1888_v6 }
 0x2b8   :  { %1221 = vmatpush.bf16.msra.mxu1 %v1891_v9 }
 0x2ba   :  { %1264 = vmatpush.bf16.msra.mxu2 %v1887_v46 }
 0x2bc   :  { %1222 = vmatpush.bf16.msra.mxu1 %v1890_v15 }
 0x2be   :  { %1265 = vmatpush.bf16.msra.mxu2 %v1886_v50 }
 0x2c0   :  { %1223 = vmatpush.bf16.msra.mxu1 %v1889_v3 }
 0x2c2   :  { %1266 = vmatpush.bf16.msra.mxu2 %v1885_v25 }
 0x330   :  { %v1058_v5 = vpop.f32.mrf.mxu1 }
 0x331   :  { %v1094_v49 = vmul.f32 %v1058_v5, %v2390_v45 }
 0x333   :  { %v1096_v19 = vmul.f32 %v1094_v49, %v1094_v49 }
 0x338   :  { %v1091_v18 = vpop.f32.mrf.mxu2 }
 0x339   :  { %v1095_v20 = vmul.f32 %v1091_v18, %v2390_v45 }
 0x33b   :  { %v1097_v21 = vsub.f32 %v1095_v20, %v1096_v19 }
 0x33d   :  { %v1098_v27 = vmax.f32 %v1097_v21, 0.0 }
 0x33f   :  { %v1100_v29 = vadd.f32 1e-05, %v1098_v27 }
 0x341   :  { %1913 = vrsqrt.f32 %v1100_v29  ;;  %vm1107_vm0 = vweird.f32 %v1100_v29 }
 0x347   :  { %v1914_v33 = vpop.eup %1913 }
 0x348   :  { %v1102_v34 = vmul.f32 %v1914_v33, %v1100_v29  ;;  %vm1108_vm13 = vweird.f32 %v1914_v33 }
 0x349   :  { %vm1109_vm11 = vmor %vm1107_vm0, %vm1108_vm13  ;;  %vm2816_vm13 = vnez %v2779_v30 }
 0x34a   :  { %v1103_v38 = vmul.f32 %v1914_v33, %v1102_v34 }
 0x34c   :  { %v1104_v40 = vmul.f32 0.5, %v1103_v38 }
 0x34e   :  { %v1105_v41 = vsub.f32 1.5, %v1104_v40 }
 0x350   :  { %v1106_v42 = vmul.f32 %v1914_v33, %v1105_v41 }
 0x352   :  { %v1110_v24 = vsel %vm1109_vm11, %v1914_v33, %v1106_v42  ;;  %vm2818_vm11 = vnez %v2781_v31 }
 0x353   :  { %v1111_v53 = vmul.f32 %v1110_v24, %v1099_v52 }
 0x355   :  { %1756 = vmatmul.msk.f32.vlgmr.msrb.gmra.mxu1 %vm2805_vm2, %v1111_v53  ;;  %v1113_v39 = vmul.f32 %v1111_v53, %v1094_v49 }
 0x356   :  { %1829 = vmatpush.msk.msrb.mxu1 %vm2166_vm3, %v2053_v47  ;;  %vm2808_vm3 = vmmov %vm2804_vm12  ;;  %vm2815_vm12 = vnez %v2777_v26 }
 0x357   :  { %v1114_v37 = vsub.f32 %v1112_v55, %v1113_v39  ;;  %vm2817_vm0 = vmmov %vm2808_vm3 }
 0x358   :  { %1830 = vmatpush.msk.msrb.mxu1 %vm2178_vm4, %v2053_v47  ;;  %vm2809_vm4 = vnez %v2767_v2 }
 0x359   :  { %1758 = vmatmul.msk.f32.vlgmr.msrb.gmra.mxu2 %vm2806_vm10, %v1114_v37 }
 0x35a   :  { %1831 = vmatpush.msk.msrb.mxu1 %vm2190_vm5, %v2053_v47  ;;  %vm2810_vm5 = vnez %v2769_v7 }
 0x35c   :  { %1832 = vmatpush.msk.msrb.mxu1 %vm2202_vm6, %v2053_v47  ;;  %vm2811_vm6 = vnez %v2771_v10  ;;  %v1320_v10 = vpop.f32.mrf.mxu3 }
 0x35d   :  { %1775 = vmatmul.msk.bf16.vlgmr.msra.gmra.mxu1 %vm2807_vm14, %v2131_v22  ;;  %vm2819_vm14 = vmmov %vm2806_vm10 }
 0x35e   :  { %1833 = vmatpush.msk.msrb.mxu1 %vm2214_vm7, %v2053_v47  ;;  %vm2812_vm7 = vnez %v2773_v13 }
 0x360   :  { %1834 = vmatpush.msk.msrb.mxu1 %vm2226_vm8, %v2053_v47  ;;  %vm2813_vm8 = vnez %v2775_v16 }
 0x361   :  { %1793 = vmatmul.msk.bf16.vlgmr.msra.gmra.mxu2 %vm2808_vm3, %v2133_v23 }
 0x362   :  { %1835 = vmatpush.msk.msrb.mxu1 %vm2238_vm9, %v2053_v47  ;;  %vm2814_vm9 = vmmov %vm2808_vm3 }
 0x364   :  { %1836 = vmatpush.msk.msrb.mxu1 %vm2809_vm4, %v2053_v47  ;;  %v1322_v26 = vpop.f32.mrf.mxu3 }
 0x366   :  { %1837 = vmatpush.msk.msrb.mxu1 %vm2810_vm5, %v2053_v47 }
 0x368   :  { %1838 = vmatpush.msk.msrb.mxu1 %vm2811_vm6, %v2053_v47 }
 0x36a   :  { %1839 = vmatpush.msk.msrb.mxu1 %vm2812_vm7, %v2053_v47 }
 0x36c   :  { %1840 = vmatpush.msk.msrb.mxu1 %vm2813_vm8, %v2053_v47 }
 0x36d   :  { %1776 = vmatmul.msk.bf16.gmra.mxu1 %vm2814_vm9, %v2147_v35 }
 0x36e   :  { %1841 = vmatpush.msk.msrb.mxu1 %vm2815_vm12, %v2053_v47 }
 0x370   :  { %1842 = vmatpush.msk.msrb.mxu1 %vm2816_vm13, %v2053_v47 }
 0x371   :  { %1794 = vmatmul.msk.bf16.gmra.mxu2 %vm2817_vm0, %v2149_v36 }
 0x372   :  { %1843 = vmatpush.msk.msrb.mxu1 %vm2818_vm11, %v2053_v47 }
 0x374   :  { %1844 = vmatpush.msk.msrb.mxu1 %vm2787_vm15, %v2053_v47 }
 0x3d2   :  { %v1135_v22 = vpop.f32.mrf.mxu1 }
 0x3d3   :  { %v1161_v23 = vperm.slane %v1135_v22, 0 }
 0x3d5   :  { %v1162_v35 = vmul.f32 %v1161_v23, %v2586_v12  ;;  %v1163_v48 = vmul.f32 %v1161_v23, %v2584_v11  ;;  %v1164_v51 = vmul.f32 %v1161_v23, %v2588_v14  ;;  %v1165_v54 = vmul.f32 %v1161_v23, %v2599_v28  ;;  %v1325_v11 = vpop.f32.mrf.mxu3 }
 0x3da   :  { %v1225_v57 = vpop.f32.mrf.mxu1 }
 0x3dc   :  { %v1158_v44 = vpop.f32.mrf.mxu2 }
 0x3dd   :  { %v1166_v36 = vperm.slane %v1158_v44, 0  ;;  %v1327_v8 = vpop.f32.mrf.mxu3 }
 0x3df   :  { %v2678_v60 = vadd.f32 %v1166_v36, %v1162_v35  ;;  %v2680_v63 = vadd.f32 %v1166_v36, %v1163_v48  ;;  %v2682_v2 = vadd.f32 %v1166_v36, %v1164_v51  ;;  %v2684_v7 = vadd.f32 %v1166_v36, %v1165_v54 }
 0x3e2   :  { %v1227_v16 = vpop.f32.mrf.mxu1 }
 0x3e4   :  { %v1268_v13 = vpop.f32.mrf.mxu2 }
 0x3e5   :  { %v1269_v14 = vadd.f32 %v1268_v13, %v1225_v57  ;;  %v1414_v57 = vld [vmem:[%s2724_s9] sm:$0x1] }
 0x3e7   :  { %v1330_v58 = vadd.f32 %v1320_v10, %v1269_v14 }
 0x3e9   :  { %v1363_v1 = vmul.f32 %v1330_v58, %v1330_v58 }
 0x3ea   :  { %v1230_v31 = vpop.f32.mrf.mxu1 }
 0x3ec   :  { %v1270_v30 = vpop.f32.mrf.mxu2 }
 0x3ed   :  { %v1271_v32 = vadd.f32 %v1270_v30, %v1227_v16 }
 0x3ef   :  { %v2686_v56 = vadd.f32 %v1322_v26, %v1271_v32 }
 0x3f1   :  { %v1364_v61 = vmul.f32 %v2686_v56, %v2686_v56  ;;  %v1334_v4 = vadd.f32 %v2686_v56, %v1330_v58 }
 0x3f2   :  { %v1232_v62 = vpop.f32.mrf.mxu1 }
 0x3f3   :  { %v1367_v9 = vadd.f32 %v1364_v61, %v1363_v1  ;;  %v1172_v1 = vmax.f32 %v2680_v63, 0.0 }
 0x3f4   :  { %v1273_v12 = vpop.f32.mrf.mxu2 }
 0x3f5   :  { %v1274_v28 = vadd.f32 %v1273_v12, %v1230_v31 }
 0x3f7   :  { %v1332_v59 = vadd.f32 %v1325_v11, %v1274_v28 }
 0x3f9   :  { %v1365_v5 = vmul.f32 %v1332_v59, %v1332_v59  ;;  %v1335_v49 = vadd.f32 %v1334_v4, %v1332_v59  ;;  %v1173_v4 = vmax.f32 %v2682_v2, 0.0 }
 0x3fb   :  { %v1368_v15 = vadd.f32 %v1367_v9, %v1365_v5  ;;  %v1174_v9 = vmax.f32 %v2684_v7, 0.0 }
 0x3fc   :  { %v1275_v0 = vpop.f32.mrf.mxu2 }
 0x3fd   :  { %v1276_v6 = vadd.f32 %v1275_v0, %v1232_v62  ;;  %v1171_v0 = vmax.f32 %v2678_v60, 0.0 }
 0x3ff   :  { %v1333_v46 = vadd.f32 %v1327_v8, %v1276_v6 }
 0x401   :  { %v1336_v17 = vadd.f32 %v1335_v49, %v1333_v46  ;;  %v1366_v18 = vmul.f32 %v1333_v46, %v1333_v46 }
 0x403   :  { %v1337_v19 = vrot.slane %v1336_v17, 4  ;;  %v1369_v20 = vadd.f32 %v1368_v15, %v1366_v18 }
 0x405   :  { %v1338_v50 = vadd.f32 %v1337_v19, %v1336_v17  ;;  %v1370_v3 = vrot.slane %v1369_v20, 4 }
 0x407   :  { %v1339_v21 = vrot.slane %v1338_v50, 2  ;;  %v1371_v25 = vadd.f32 %v1370_v3, %v1369_v20 }
 0x409   :  { %v1340_v27 = vadd.f32 %v1339_v21, %v1338_v50  ;;  %v1372_v29 = vrot.slane %v1371_v25, 2 }
 0x40b   :  { %v1341_v33 = vrot.slane %v1340_v27, 1  ;;  %v1373_v34 = vadd.f32 %v1372_v29, %v1371_v25 }
 0x40d   :  { %v1342_v38 = vadd.f32 %v1341_v33, %v1340_v27  ;;  %v1374_v40 = vrot.slane %v1373_v34, 1 }
 0x40f   :  { %1359 = vmatmul.f32.vlgmr.msrb.gmra.mxu0 %v1342_v38  ;;  %v1375_v41 = vadd.f32 %v1374_v40, %v1373_v34 }
 0x410   :  { %1847 = vmatpush.msk.msrb.mxu0 %vm2377_vm1, %v2053_v47  ;;  %v1401_v47 = vld [vmem:[%s2723_s8] sm:$0x1]  ;;  %s2056_s8 = smov [#allocation10]  }
 0x411   :  { %1392 = vmatmul.f32.vlgmr.msrb.gmra.mxu1 %v1375_v41  ;;  %s1489_s9 = sshll.u32 %s2056_s8, 4  ;;  %s1490_s9 = int_to_ptr.vmem [resolvable:$true] %s1489_s9 }
 0x48c   :  { %v1360_v42 = vpop.f32.mrf.mxu0 }
 0x48d   :  { %v1396_v52 = vmul.f32 %v1360_v42, %v2390_v45 }
 0x48e   :  { %v1393_v24 = vpop.f32.mrf.mxu1 }
 0x48f   :  { %v1398_v53 = vmul.f32 %v1396_v52, %v1396_v52  ;;  %v1397_v55 = vmul.f32 %v1393_v24, %v2390_v45 }
 0x491   :  { %v1399_v39 = vsub.f32 %v1397_v55, %v1398_v53 }
 0x493   :  { %v1400_v37 = vmax.f32 %v1399_v39, 0.0 }
 0x495   :  { %v1402_v22 = vadd.f32 1e-05, %v1400_v37 }
 0x497   :  { %1915 = vrsqrt.f32 %v1402_v22  ;;  %vm1409_vm1 = vweird.f32 %v1402_v22 }
 0x49d   :  { %v1916_v23 = vpop.eup %1915 }
 0x49e   :  { %v1404_v35 = vmul.f32 %v1916_v23, %v1402_v22  ;;  %vm1410_vm15 = vweird.f32 %v1916_v23 }
 0x49f   :  { %vm1411_vm2 = vmor %vm1409_vm1, %vm1410_vm15 }
 0x4a0   :  { %v1405_v44 = vmul.f32 %v1916_v23, %v1404_v35 }
 0x4a2   :  { %v1406_v48 = vmul.f32 0.5, %v1405_v44 }
 0x4a4   :  { %v1407_v51 = vsub.f32 1.5, %v1406_v48 }
 0x4a6   :  { %v1408_v43 = vmul.f32 %v1916_v23, %v1407_v51 }
 0x4a8   :  { %v1412_v54 = vsel %vm1411_vm2, %v1916_v23, %v1408_v43 }
 0x4a9   :  { %v1413_v36 = vmul.f32 %v1412_v54, %v1401_v47 }
 0x4ab   :  { %1846 = vmatmul.msk.f32.vlgmr.msra.gmra.mxu0 %vm2806_vm10, %v1413_v36  ;;  %v1415_v45 = vmul.f32 %v1413_v36, %v1396_v52 }
 0x4ad   :  { %v1416_v10 = vsub.f32 %v1414_v57, %v1415_v45 }
 0x4b3   :  { %1848 = vmatmul.msk.f32.vlgmr.msrb.gmra.mxu0 %vm2819_vm14, %v1416_v10 }
 0x528   :  { %v1437_v13 = vpop.f32.mrf.mxu0 }
 0x529   :  { %v1463_v16 = vperm.slane %v1437_v13, 0 }
 0x52b   :  { %v1464_v26 = vmul.f32 %v1463_v16, %v1330_v58  ;;  %v1465_v31 = vmul.f32 %v1463_v16, %v2686_v56  ;;  %v1466_v32 = vmul.f32 %v1463_v16, %v1332_v59  ;;  %v1467_v11 = vmul.f32 %v1463_v16, %v1333_v46 }
 0x530   :  { %v1460_v30 = vpop.f32.mrf.mxu0 }
 0x531   :  { %v1468_v12 = vperm.slane %v1460_v30, 0 }
 0x533   :  { %v1469_v14 = vadd.f32 %v1468_v12, %v1464_v26  ;;  %v1470_v28 = vadd.f32 %v1468_v12, %v1465_v31  ;;  %v1471_v61 = vadd.f32 %v1468_v12, %v1466_v32  ;;  %v1472_v62 = vadd.f32 %v1468_v12, %v1467_v11 }
 0x535   :  { %v1473_v5 = vmax.f32 %v1469_v14, 0.0  ;;  %v1474_v6 = vmax.f32 %v1470_v28, 0.0  ;;  %v1475_v8 = vmax.f32 %v1471_v61, 0.0  ;;  %v1476_v58 = vmax.f32 %v1472_v62, 0.0 }
 0x537   :  { %v1477_v56 = vadd.f32 %v1473_v5, %v1171_v0  ;;  %v1478_v59 = vadd.f32 %v1474_v6, %v1172_v1  ;;  %v1479_v49 = vadd.f32 %v1475_v8, %v1173_v4  ;;  %v1480_v60 = vadd.f32 %v1476_v58, %v1174_v9 }
 0x539   :  { %1481 = vst [vmem:[#allocation10] sm:$0xff] %v1477_v56 }
 0x53a   :  { %1482 = vst [vmem:[#allocation10 + $0x8] sm:$0xff] %v1478_v59 }
 0x53b   :  { %1483 = vst [vmem:[#allocation10 + $0x10] sm:$0xff] %v1479_v49 }
 0x53c   :  { %1484 = vst [vmem:[#allocation10 + $0x18] sm:$0xff] %v1480_v60 }
 0x53d   :  { %1497 = dma.vmem_to_hbm [thread:$0]  %s1490_s9, 512, %s1492_s23, [#allocation4], %s2049_s25, %s2049_s25, %s2050_s26  }
 0x53e   :  { %2043 = dma.done.wait [#allocation4], 512  }
 0x53f   :  { %2044 = vsyncadd [#allocation4], 4294966784 }
 0x540   :  { %1502 = vsyncpa [#allocation3], 1 }
 0x541   :  { %1503 = vsyncpa [#allocation6], 1 }
 0x542   :  { %1504 = vsyncpa [#allocation9], 1 }
 0x543   :  { %1505 = vsyncpa [#allocation4], 1 }

</bundles_post_ra>
